<compile_context>
chip_gen: v7x
topology: tpu7x:2x2x1
jax: 0.10.0
libtpu: 0.0.40
codegen_flags: <defaults>
</compile_context>

<pallas_src>
import functools

import jax
import jax.numpy as jnp
import numpy as np
from jax import lax
from jax.experimental import pallas as pl
from jax.experimental.pallas import tpu as pltpu


def _down_block_kernel(Nb, Hp, Wp, Cin, Cout, use_resid, *refs):
    """One batch-block per grid step; everything stays resident in VMEM."""
    if use_resid:
        (x_ref, w1_ref, s1_ref, b1_ref, w2_ref, s2_ref, b2_ref,
         wr_ref, br_ref, o_ref, pad1, pad2) = refs
    else:
        (x_ref, w1_ref, s1_ref, b1_ref, w2_ref, s2_ref, b2_ref,
         o_ref, pad1, pad2) = refs

    M = Nb * Hp * Wp
    HW = Hp * Wp

    # ---- 2x2 max-pool, stride 2 -------------------------------------------
    # Pool window pre-folded into a leading dim of size 4 (index = 2*dy+dx):
    # pure VPU elementwise max over static slices, already in bf16.
    pooled = jnp.maximum(jnp.maximum(x_ref[:, 0], x_ref[:, 1]),
                         jnp.maximum(x_ref[:, 2], x_ref[:, 3]))  # (Nb,Hp,Wp,Cin)

    def conv3x3_bn_relu(pad_ref, inp_bf, cin, w_ref, s_ref, b_ref):
        # Zero only the 1-pixel border; the interior is fully overwritten
        # below.  Kept per-step (not program_id-gated) so the kernel is
        # correct even when the "parallel" batch axis is sharded across
        # TensorCores with per-core scratch.
        zrow = jnp.zeros((Nb, 1, Wp + 2, cin), pad_ref.dtype)
        zcol = jnp.zeros((Nb, Hp, 1, cin), pad_ref.dtype)
        pad_ref[:, 0:1, :, :] = zrow
        pad_ref[:, Hp + 1:Hp + 2, :, :] = zrow
        pad_ref[:, 1:Hp + 1, 0:1, :] = zcol
        pad_ref[:, 1:Hp + 1, Wp + 1:Wp + 2, :] = zcol
        pad_ref[:, 1:Hp + 1, 1:Wp + 1, :] = inp_bf

        # 3x3 conv as 9 accumulated MXU dots with K=cin (no lane concat, no
        # materialized (M, 9*cin) patch blob; each tap dies right after its
        # dot so vreg pressure stays bounded).
        acc = None
        for dy in range(3):
            for dx in range(3):
                t = dy * 3 + dx
                tap = pad_ref[:, dy:dy + Hp, dx:dx + Wp, :].reshape(M, cin)
                part = jnp.dot(tap, w_ref[t * cin:(t + 1) * cin, :],
                               preferred_element_type=jnp.float32)
                acc = part if acc is None else acc + part
        # Folded BatchNorm(eval) + ReLU in f32.
        return jnp.maximum(acc * s_ref[...] + b_ref[...], 0.0)

    h1 = conv3x3_bn_relu(pad1, pooled, Cin, w1_ref, s1_ref, b1_ref)
    out = conv3x3_bn_relu(
        pad2, h1.reshape(Nb, Hp, Wp, Cout).astype(jnp.bfloat16),
        Cout, w2_ref, s2_ref, b2_ref)

    # Optional 1x1 residual conv on the pooled input.  PyTorch adds it AFTER
    # the second ReLU (x_out += resid_connection(x)), so no extra activation.
    if use_resid:
        out = out + (jnp.dot(pooled.reshape(M, Cin), wr_ref[...],
                             preferred_element_type=jnp.float32)
                     + br_ref[...])

    # Lane-dense (Cout on lanes) store, no in-kernel transpose; cast before
    # the store so only bf16 leaves the accumulator.
    o_ref[...] = out.reshape(Nb, HW, Cout).astype(o_ref.dtype)


def _fold_bn(conv_bias, gamma, beta, mean, var, eps):
    """Fold conv bias + eval-mode BatchNorm into a per-channel scale/bias."""
    scale = gamma / jnp.sqrt(var + eps)
    bias = scale * (conv_bias - mean) + beta
    return scale, bias


def down_block_pallas(x_nchw, w1_oihw, b1, bn1, w2_oihw, b2, bn2,
                      wr_oihw=None, br=None, *, use_resid=False, eps=1e-5,
                      batch_block=None, out_dtype=jnp.bfloat16):
    """DownBlock forward.  Takes / returns PyTorch NCHW / OIHW layouts."""
    N, Cin, H, W = x_nchw.shape
    Cout = w1_oihw.shape[0]
    assert H % 2 == 0 and W % 2 == 0, "MaxPool2d(2) path assumes even H and W"
    Hp, Wp = H // 2, W // 2
    Nb = N if batch_block is None else batch_block
    assert N % Nb == 0

    # NCHW -> (N, 4, Hp, Wp, Cin): channels-last, 2x2 pool window folded into
    # one leading dim (index = 2*dy + dx), bf16 so the dominant input DMA and
    # its double buffers are halved.
    x4 = (jnp.transpose(x_nchw.reshape(N, Cin, Hp, 2, Wp, 2),
                        (0, 3, 5, 2, 4, 1))
          .reshape(N, 4, Hp, Wp, Cin).astype(jnp.bfloat16))

    def im2col_w(w_oihw):
        # OIHW -> (kh*kw*Cin, Cout), tap-major (dy, dx, ci), bf16 for the MXU.
        co, ci, kh, kw = w_oihw.shape
        return (jnp.transpose(w_oihw, (2, 3, 1, 0))
                .reshape(kh * kw * ci, co).astype(jnp.bfloat16))

    w1c, w2c = im2col_w(w1_oihw), im2col_w(w2_oihw)
    s1, fb1 = _fold_bn(b1, *bn1, eps)
    s2, fb2 = _fold_bn(b2, *bn2, eps)
    s1, fb1 = s1.reshape(1, Cout), fb1.reshape(1, Cout)
    s2, fb2 = s2.reshape(1, Cout), fb2.reshape(1, Cout)

    args = [x4, w1c, s1, fb1, w2c, s2, fb2]

    def full_spec(a):
        nd = a.ndim
        return pl.BlockSpec(a.shape, lambda n, _nd=nd: (0,) * _nd)

    in_specs = [pl.BlockSpec((Nb, 4, Hp, Wp, Cin),
                             lambda n: (n, 0, 0, 0, 0))]
    in_specs += [full_spec(a) for a in args[1:]]

    if use_resid:
        wrc = im2col_w(wr_oihw)                            # (Cin, Cout) bf16
        brr = br.reshape(1, Cout).astype(jnp.float32)
        args += [wrc, brr]
        in_specs += [full_spec(wrc), full_spec(brr)]

    kernel = functools.partial(_down_block_kernel, Nb, Hp, Wp, Cin, Cout,
                               use_resid)

    out = pl.pallas_call(
        kernel,
        out_shape=jax.ShapeDtypeStruct((N, Hp * Wp, Cout), out_dtype),
        grid=(N // Nb,),
        in_specs=in_specs,
        out_specs=pl.BlockSpec((Nb, Hp * Wp, Cout), lambda n: (n, 0, 0)),
        scratch_shapes=[
            pltpu.VMEM((Nb, Hp + 2, Wp + 2, Cin), jnp.bfloat16),   # conv1 pad
            pltpu.VMEM((Nb, Hp + 2, Wp + 2, Cout), jnp.bfloat16),  # conv2 pad
        ],
        compiler_params=pltpu.CompilerParams(
            dimension_semantics=("parallel",),
            # Above v5e's 16 MiB scoped default; for real WNet shapes raise to
            # 64-96 MiB on v5e/v6e and add row-strip tiling on v7x (64 MiB).
            vmem_limit_bytes=32 * 1024 * 1024),
    )(*args)

    # (N, Hp*Wp, Cout) lane-dense slab -> NCHW permute in XLA (cheap, outside
    # the kernel).  Prefer to stay channels-last when chaining blocks.
    return jnp.transpose(out.reshape(N, Hp, Wp, Cout), (0, 3, 1, 2))


if __name__ == "__main__":
    N, Cin, Cout, H, W = 2, 4, 8, 16, 16
    Hp, Wp = H // 2, W // 2
    eps = 1e-5
    ks = jax.random.split(jax.random.PRNGKey(0), 16)

    # Input in PyTorch NCHW layout.
    x_nchw = jax.random.normal(ks[0], (N, Cin, H, W), jnp.float32)

    # Conv weights in PyTorch OIHW layout + BatchNorm eval-mode params.
    w1_oihw = jax.random.normal(ks[1], (Cout, Cin, 3, 3), jnp.float32) * 0.1
    b1 = jax.random.normal(ks[2], (Cout,), jnp.float32) * 0.1
    w2_oihw = jax.random.normal(ks[3], (Cout, Cout, 3, 3), jnp.float32) * 0.1
    b2 = jax.random.normal(ks[4], (Cout,), jnp.float32) * 0.1
    g1 = 1.0 + 0.1 * jax.random.normal(ks[5], (Cout,), jnp.float32)
    be1 = 0.1 * jax.random.normal(ks[6], (Cout,), jnp.float32)
    m1 = 0.1 * jax.random.normal(ks[7], (Cout,), jnp.float32)
    v1 = 0.5 + jax.random.uniform(ks[8], (Cout,), jnp.float32)
    g2 = 1.0 + 0.1 * jax.random.normal(ks[9], (Cout,), jnp.float32)
    be2 = 0.1 * jax.random.normal(ks[10], (Cout,), jnp.float32)
    m2 = 0.1 * jax.random.normal(ks[11], (Cout,), jnp.float32)
    v2 = 0.5 + jax.random.uniform(ks[12], (Cout,), jnp.float32)
    wr_oihw = jax.random.normal(ks[13], (Cout, Cin, 1, 1), jnp.float32) * 0.1
    br = 0.1 * jax.random.normal(ks[14], (Cout,), jnp.float32)

    bn1 = (g1, be1, m1, v1)
    bn2 = (g2, be2, m2, v2)

    # ---- plain-JAX reference (bf16 at the same cast points as the kernel) ---
    def ref_down_block(x, use_resid):
        xh = jnp.transpose(x, (0, 2, 3, 1))
        p = xh.reshape(N, Hp, 2, Wp, 2, Cin).max(axis=(2, 4))

        def cna(h, w_oihw, bias, g, be, m, v):
            w = jnp.transpose(w_oihw, (2, 3, 1, 0)).astype(jnp.bfloat16)
            y = lax.conv_general_dilated(
                h.astype(jnp.bfloat16), w, (1, 1), ((1, 1), (1, 1)),
                dimension_numbers=("NHWC", "HWIO", "NHWC"),
                preferred_element_type=jnp.float32) + bias
            y = (y - m) / jnp.sqrt(v + eps) * g + be
            return jnp.maximum(y, 0.0)

        y = cna(p, w1_oihw, b1, *bn1)
        y = cna(y, w2_oihw, b2, *bn2)
        if use_resid:
            wr = jnp.transpose(wr_oihw, (2, 3, 1, 0)).astype(jnp.bfloat16)
            y = y + (lax.conv_general_dilated(
                p.astype(jnp.bfloat16), wr, (1, 1), ((0, 0), (0, 0)),
                dimension_numbers=("NHWC", "HWIO", "NHWC"),
                preferred_element_type=jnp.float32) + br)
        # Kernel emits bf16; mirror that rounding for the comparison.
        return jnp.transpose(y.astype(jnp.bfloat16), (0, 3, 1, 2))

    # Two configs: (plain path, batch tiled -> 2 grid steps) and
    # (residual path, whole batch folded into one matmul -> 1 grid step).
    for use_resid, batch_block in ((False, 1), (True, None)):
        out_nchw = down_block_pallas(
            x_nchw, w1_oihw, b1, bn1, w2_oihw, b2, bn2,
            wr_oihw=wr_oihw, br=br, use_resid=use_resid, eps=eps,
            batch_block=batch_block)
        jax.block_until_ready(out_nchw)
        np.testing.assert_allclose(
            np.asarray(out_nchw.astype(jnp.float32)),
            np.asarray(ref_down_block(x_nchw, use_resid).astype(jnp.float32)),
            rtol=1e-2, atol=1e-2)

    print("KERNEL_OK")
</pallas_src>

<mosaic_0001>
module attributes {stable_mosaic.version = 11 : i64} {
  func.func @_down_block_kernel(%arg0: i32, %arg1: memref<1x4x8x8x4xbf16, #tpu.memory_space<vmem>>, %arg2: memref<36x8xbf16, #tpu.memory_space<vmem>>, %arg3: memref<1x8xf32, #tpu.memory_space<vmem>>, %arg4: memref<1x8xf32, #tpu.memory_space<vmem>>, %arg5: memref<72x8xbf16, #tpu.memory_space<vmem>>, %arg6: memref<1x8xf32, #tpu.memory_space<vmem>>, %arg7: memref<1x8xf32, #tpu.memory_space<vmem>>, %arg8: memref<1x64x8xbf16, #tpu.memory_space<vmem>>, %arg9: memref<1x10x10x4xbf16, #tpu.memory_space<vmem>>, %arg10: memref<1x10x10x8xbf16, #tpu.memory_space<vmem>>) attributes {dimension_semantics = [#tpu.dimension_semantics<parallel>], iteration_bounds = array<i64: 2>, scalar_prefetch = 0 : i64, scratch_operands = 2 : i64, tpu.core_type = #tpu.core_type<tc>, window_params = [{transform_indices = @transform_0, window_bounds = array<i64: 1, 4, 8, 8, 4>}, {pipeline_mode = #tpu.pipeline_mode<synchronous>, transform_indices = @transform_1, window_bounds = array<i64: 36, 8>}, {pipeline_mode = #tpu.pipeline_mode<synchronous>, transform_indices = @transform_2, window_bounds = array<i64: 1, 8>}, {pipeline_mode = #tpu.pipeline_mode<synchronous>, transform_indices = @transform_3, window_bounds = array<i64: 1, 8>}, {pipeline_mode = #tpu.pipeline_mode<synchronous>, transform_indices = @transform_4, window_bounds = array<i64: 72, 8>}, {pipeline_mode = #tpu.pipeline_mode<synchronous>, transform_indices = @transform_5, window_bounds = array<i64: 1, 8>}, {pipeline_mode = #tpu.pipeline_mode<synchronous>, transform_indices = @transform_6, window_bounds = array<i64: 1, 8>}, {transform_indices = @transform_7, window_bounds = array<i64: 1, 64, 8>}]} {
    %c0 = arith.constant 0 : index
    %c0_0 = arith.constant 0 : index
    %c0_1 = arith.constant 0 : index
    %c0_2 = arith.constant 0 : index
    %c0_3 = arith.constant 0 : index
    %0 = vector.load %arg1[%c0, %c0_0, %c0_1, %c0_2, %c0_3] : memref<1x4x8x8x4xbf16, #tpu.memory_space<vmem>>, vector<1x1x8x8x4xbf16>
    %1 = vector.shape_cast %0 : vector<1x1x8x8x4xbf16> to vector<1x8x8x4xbf16>
    %c0_4 = arith.constant 0 : index
    %c1 = arith.constant 1 : index
    %c0_5 = arith.constant 0 : index
    %c0_6 = arith.constant 0 : index
    %c0_7 = arith.constant 0 : index
    %2 = vector.load %arg1[%c0_4, %c1, %c0_5, %c0_6, %c0_7] : memref<1x4x8x8x4xbf16, #tpu.memory_space<vmem>>, vector<1x1x8x8x4xbf16>
    %3 = vector.shape_cast %2 : vector<1x1x8x8x4xbf16> to vector<1x8x8x4xbf16>
    %4 = arith.maximumf %1, %3 : vector<1x8x8x4xbf16>
    %c0_8 = arith.constant 0 : index
    %c2 = arith.constant 2 : index
    %c0_9 = arith.constant 0 : index
    %c0_10 = arith.constant 0 : index
    %c0_11 = arith.constant 0 : index
    %5 = vector.load %arg1[%c0_8, %c2, %c0_9, %c0_10, %c0_11] : memref<1x4x8x8x4xbf16, #tpu.memory_space<vmem>>, vector<1x1x8x8x4xbf16>
    %6 = vector.shape_cast %5 : vector<1x1x8x8x4xbf16> to vector<1x8x8x4xbf16>
    %c0_12 = arith.constant 0 : index
    %c3 = arith.constant 3 : index
    %c0_13 = arith.constant 0 : index
    %c0_14 = arith.constant 0 : index
    %c0_15 = arith.constant 0 : index
    %7 = vector.load %arg1[%c0_12, %c3, %c0_13, %c0_14, %c0_15] : memref<1x4x8x8x4xbf16, #tpu.memory_space<vmem>>, vector<1x1x8x8x4xbf16>
    %8 = vector.shape_cast %7 : vector<1x1x8x8x4xbf16> to vector<1x8x8x4xbf16>
    %9 = arith.maximumf %6, %8 : vector<1x8x8x4xbf16>
    %10 = arith.maximumf %4, %9 : vector<1x8x8x4xbf16>
    %cst = arith.constant 0.000000e+00 : bf16
    %11 = vector.broadcast %cst : bf16 to vector<1x1x10x4xbf16>
    %cst_16 = arith.constant 0.000000e+00 : bf16
    %12 = vector.broadcast %cst_16 : bf16 to vector<1x8x1x4xbf16>
    %c0_17 = arith.constant 0 : index
    %c0_18 = arith.constant 0 : index
    %c0_19 = arith.constant 0 : index
    %c0_20 = arith.constant 0 : index
    %13 = vector.load %arg9[%c0_17, %c0_18, %c0_19, %c0_20] : memref<1x10x10x4xbf16, #tpu.memory_space<vmem>>, vector<1x1x10x4xbf16>
    tpu.vector_store %arg9[%c0_17, %c0_18, %c0_19, %c0_20], %11 {strides = array<i32>} : memref<1x10x10x4xbf16, #tpu.memory_space<vmem>>, vector<1x1x10x4xbf16>,
    %c0_21 = arith.constant 0 : index
    %c9 = arith.constant 9 : index
    %c0_22 = arith.constant 0 : index
    %c0_23 = arith.constant 0 : index
    %14 = vector.load %arg9[%c0_21, %c9, %c0_22, %c0_23] : memref<1x10x10x4xbf16, #tpu.memory_space<vmem>>, vector<1x1x10x4xbf16>
    tpu.vector_store %arg9[%c0_21, %c9, %c0_22, %c0_23], %11 {strides = array<i32>} : memref<1x10x10x4xbf16, #tpu.memory_space<vmem>>, vector<1x1x10x4xbf16>,
    %c0_24 = arith.constant 0 : index
    %c1_25 = arith.constant 1 : index
    %c0_26 = arith.constant 0 : index
    %c0_27 = arith.constant 0 : index
    %15 = vector.load %arg9[%c0_24, %c1_25, %c0_26, %c0_27] : memref<1x10x10x4xbf16, #tpu.memory_space<vmem>>, vector<1x8x1x4xbf16>
    tpu.vector_store %arg9[%c0_24, %c1_25, %c0_26, %c0_27], %12 {strides = array<i32>} : memref<1x10x10x4xbf16, #tpu.memory_space<vmem>>, vector<1x8x1x4xbf16>,
    %c0_28 = arith.constant 0 : index
    %c1_29 = arith.constant 1 : index
    %c9_30 = arith.constant 9 : index
    %c0_31 = arith.constant 0 : index
    %16 = vector.load %arg9[%c0_28, %c1_29, %c9_30, %c0_31] : memref<1x10x10x4xbf16, #tpu.memory_space<vmem>>, vector<1x8x1x4xbf16>
    tpu.vector_store %arg9[%c0_28, %c1_29, %c9_30, %c0_31], %12 {strides = array<i32>} : memref<1x10x10x4xbf16, #tpu.memory_space<vmem>>, vector<1x8x1x4xbf16>,
    %c0_32 = arith.constant 0 : index
    %c1_33 = arith.constant 1 : index
    %c1_34 = arith.constant 1 : index
    %c0_35 = arith.constant 0 : index
    %17 = vector.load %arg9[%c0_32, %c1_33, %c1_34, %c0_35] : memref<1x10x10x4xbf16, #tpu.memory_space<vmem>>, vector<1x8x8x4xbf16>
    tpu.vector_store %arg9[%c0_32, %c1_33, %c1_34, %c0_35], %10 {strides = array<i32>} : memref<1x10x10x4xbf16, #tpu.memory_space<vmem>>, vector<1x8x8x4xbf16>,
    %c0_36 = arith.constant 0 : index
    %c0_37 = arith.constant 0 : index
    %c0_38 = arith.constant 0 : index
    %c0_39 = arith.constant 0 : index
    %18 = vector.load %arg9[%c0_36, %c0_37, %c0_38, %c0_39] : memref<1x10x10x4xbf16, #tpu.memory_space<vmem>>, vector<1x8x8x4xbf16>
    %19 = vector.shape_cast %18 : vector<1x8x8x4xbf16> to vector<64x4xbf16>
    %c0_40 = arith.constant 0 : index
    %c0_41 = arith.constant 0 : index
    %20 = vector.load %arg2[%c0_40, %c0_41] : memref<36x8xbf16, #tpu.memory_space<vmem>>, vector<4x8xbf16>
    %cst_42 = arith.constant dense<0.000000e+00> : vector<64x8xf32>
    %21 = tpu.matmul %19, %20, %cst_42 {dimension_numbers = #tpu.dot_dimension_numbers<[1], [0], [0], [1], [0, 0, 1, 1], [], []>} : vector<64x4xbf16>, vector<4x8xbf16>, vector<64x8xf32> -> vector<64x8xf32>
    %c0_43 = arith.constant 0 : index
    %c0_44 = arith.constant 0 : index
    %c1_45 = arith.constant 1 : index
    %c0_46 = arith.constant 0 : index
    %22 = vector.load %arg9[%c0_43, %c0_44, %c1_45, %c0_46] : memref<1x10x10x4xbf16, #tpu.memory_space<vmem>>, vector<1x8x8x4xbf16>
    %23 = vector.shape_cast %22 : vector<1x8x8x4xbf16> to vector<64x4xbf16>
    %c4 = arith.constant 4 : index
    %c0_47 = arith.constant 0 : index
    %24 = vector.load %arg2[%c4, %c0_47] : memref<36x8xbf16, #tpu.memory_space<vmem>>, vector<4x8xbf16>
    %cst_48 = arith.constant dense<0.000000e+00> : vector<64x8xf32>
    %25 = tpu.matmul %23, %24, %cst_48 {dimension_numbers = #tpu.dot_dimension_numbers<[1], [0], [0], [1], [0, 0, 1, 1], [], []>} : vector<64x4xbf16>, vector<4x8xbf16>, vector<64x8xf32> -> vector<64x8xf32>
    %26 = arith.addf %21, %25 : vector<64x8xf32>
    %c0_49 = arith.constant 0 : index
    %c0_50 = arith.constant 0 : index
    %c2_51 = arith.constant 2 : index
    %c0_52 = arith.constant 0 : index
    %27 = vector.load %arg9[%c0_49, %c0_50, %c2_51, %c0_52] : memref<1x10x10x4xbf16, #tpu.memory_space<vmem>>, vector<1x8x8x4xbf16>
    %28 = vector.shape_cast %27 : vector<1x8x8x4xbf16> to vector<64x4xbf16>
    %c8 = arith.constant 8 : index
    %c0_53 = arith.constant 0 : index
    %29 = vector.load %arg2[%c8, %c0_53] : memref<36x8xbf16, #tpu.memory_space<vmem>>, vector<4x8xbf16>
    %cst_54 = arith.constant dense<0.000000e+00> : vector<64x8xf32>
    %30 = tpu.matmul %28, %29, %cst_54 {dimension_numbers = #tpu.dot_dimension_numbers<[1], [0], [0], [1], [0, 0, 1, 1], [], []>} : vector<64x4xbf16>, vector<4x8xbf16>, vector<64x8xf32> -> vector<64x8xf32>
    %31 = arith.addf %26, %30 : vector<64x8xf32>
    %c0_55 = arith.constant 0 : index
    %c1_56 = arith.constant 1 : index
    %c0_57 = arith.constant 0 : index
    %c0_58 = arith.constant 0 : index
    %32 = vector.load %arg9[%c0_55, %c1_56, %c0_57, %c0_58] : memref<1x10x10x4xbf16, #tpu.memory_space<vmem>>, vector<1x8x8x4xbf16>
    %33 = vector.shape_cast %32 : vector<1x8x8x4xbf16> to vector<64x4xbf16>
    %c12 = arith.constant 12 : index
    %c0_59 = arith.constant 0 : index
    %34 = vector.load %arg2[%c12, %c0_59] : memref<36x8xbf16, #tpu.memory_space<vmem>>, vector<4x8xbf16>
    %cst_60 = arith.constant dense<0.000000e+00> : vector<64x8xf32>
    %35 = tpu.matmul %33, %34, %cst_60 {dimension_numbers = #tpu.dot_dimension_numbers<[1], [0], [0], [1], [0, 0, 1, 1], [], []>} : vector<64x4xbf16>, vector<4x8xbf16>, vector<64x8xf32> -> vector<64x8xf32>
    %36 = arith.addf %31, %35 : vector<64x8xf32>
    %c0_61 = arith.constant 0 : index
    %c1_62 = arith.constant 1 : index
    %c1_63 = arith.constant 1 : index
    %c0_64 = arith.constant 0 : index
    %37 = vector.load %arg9[%c0_61, %c1_62, %c1_63, %c0_64] : memref<1x10x10x4xbf16, #tpu.memory_space<vmem>>, vector<1x8x8x4xbf16>
    %38 = vector.shape_cast %37 : vector<1x8x8x4xbf16> to vector<64x4xbf16>
    %c16 = arith.constant 16 : index
    %c0_65 = arith.constant 0 : index
    %39 = vector.load %arg2[%c16, %c0_65] : memref<36x8xbf16, #tpu.memory_space<vmem>>, vector<4x8xbf16>
    %cst_66 = arith.constant dense<0.000000e+00> : vector<64x8xf32>
    %40 = tpu.matmul %38, %39, %cst_66 {dimension_numbers = #tpu.dot_dimension_numbers<[1], [0], [0], [1], [0, 0, 1, 1], [], []>} : vector<64x4xbf16>, vector<4x8xbf16>, vector<64x8xf32> -> vector<64x8xf32>
    %41 = arith.addf %36, %40 : vector<64x8xf32>
    %c0_67 = arith.constant 0 : index
    %c1_68 = arith.constant 1 : index
    %c2_69 = arith.constant 2 : index
    %c0_70 = arith.constant 0 : index
    %42 = vector.load %arg9[%c0_67, %c1_68, %c2_69, %c0_70] : memref<1x10x10x4xbf16, #tpu.memory_space<vmem>>, vector<1x8x8x4xbf16>
    %43 = vector.shape_cast %42 : vector<1x8x8x4xbf16> to vector<64x4xbf16>
    %c20 = arith.constant 20 : index
    %c0_71 = arith.constant 0 : index
    %44 = vector.load %arg2[%c20, %c0_71] : memref<36x8xbf16, #tpu.memory_space<vmem>>, vector<4x8xbf16>
    %cst_72 = arith.constant dense<0.000000e+00> : vector<64x8xf32>
    %45 = tpu.matmul %43, %44, %cst_72 {dimension_numbers = #tpu.dot_dimension_numbers<[1], [0], [0], [1], [0, 0, 1, 1], [], []>} : vector<64x4xbf16>, vector<4x8xbf16>, vector<64x8xf32> -> vector<64x8xf32>
    %46 = arith.addf %41, %45 : vector<64x8xf32>
    %c0_73 = arith.constant 0 : index
    %c2_74 = arith.constant 2 : index
    %c0_75 = arith.constant 0 : index
    %c0_76 = arith.constant 0 : index
    %47 = vector.load %arg9[%c0_73, %c2_74, %c0_75, %c0_76] : memref<1x10x10x4xbf16, #tpu.memory_space<vmem>>, vector<1x8x8x4xbf16>
    %48 = vector.shape_cast %47 : vector<1x8x8x4xbf16> to vector<64x4xbf16>
    %c24 = arith.constant 24 : index
    %c0_77 = arith.constant 0 : index
    %49 = vector.load %arg2[%c24, %c0_77] : memref<36x8xbf16, #tpu.memory_space<vmem>>, vector<4x8xbf16>
    %cst_78 = arith.constant dense<0.000000e+00> : vector<64x8xf32>
    %50 = tpu.matmul %48, %49, %cst_78 {dimension_numbers = #tpu.dot_dimension_numbers<[1], [0], [0], [1], [0, 0, 1, 1], [], []>} : vector<64x4xbf16>, vector<4x8xbf16>, vector<64x8xf32> -> vector<64x8xf32>
    %51 = arith.addf %46, %50 : vector<64x8xf32>
    %c0_79 = arith.constant 0 : index
    %c2_80 = arith.constant 2 : index
    %c1_81 = arith.constant 1 : index
    %c0_82 = arith.constant 0 : index
    %52 = vector.load %arg9[%c0_79, %c2_80, %c1_81, %c0_82] : memref<1x10x10x4xbf16, #tpu.memory_space<vmem>>, vector<1x8x8x4xbf16>
    %53 = vector.shape_cast %52 : vector<1x8x8x4xbf16> to vector<64x4xbf16>
    %c28 = arith.constant 28 : index
    %c0_83 = arith.constant 0 : index
    %54 = vector.load %arg2[%c28, %c0_83] : memref<36x8xbf16, #tpu.memory_space<vmem>>, vector<4x8xbf16>
    %cst_84 = arith.constant dense<0.000000e+00> : vector<64x8xf32>
    %55 = tpu.matmul %53, %54, %cst_84 {dimension_numbers = #tpu.dot_dimension_numbers<[1], [0], [0], [1], [0, 0, 1, 1], [], []>} : vector<64x4xbf16>, vector<4x8xbf16>, vector<64x8xf32> -> vector<64x8xf32>
    %56 = arith.addf %51, %55 : vector<64x8xf32>
    %c0_85 = arith.constant 0 : index
    %c2_86 = arith.constant 2 : index
    %c2_87 = arith.constant 2 : index
    %c0_88 = arith.constant 0 : index
    %57 = vector.load %arg9[%c0_85, %c2_86, %c2_87, %c0_88] : memref<1x10x10x4xbf16, #tpu.memory_space<vmem>>, vector<1x8x8x4xbf16>
    %58 = vector.shape_cast %57 : vector<1x8x8x4xbf16> to vector<64x4xbf16>
    %c32 = arith.constant 32 : index
    %c0_89 = arith.constant 0 : index
    %59 = vector.load %arg2[%c32, %c0_89] : memref<36x8xbf16, #tpu.memory_space<vmem>>, vector<4x8xbf16>
    %cst_90 = arith.constant dense<0.000000e+00> : vector<64x8xf32>
    %60 = tpu.matmul %58, %59, %cst_90 {dimension_numbers = #tpu.dot_dimension_numbers<[1], [0], [0], [1], [0, 0, 1, 1], [], []>} : vector<64x4xbf16>, vector<4x8xbf16>, vector<64x8xf32> -> vector<64x8xf32>
    %61 = arith.addf %56, %60 : vector<64x8xf32>
    %c0_91 = arith.constant 0 : index
    %c0_92 = arith.constant 0 : index
    %62 = vector.load %arg3[%c0_91, %c0_92] : memref<1x8xf32, #tpu.memory_space<vmem>>, vector<1x8xf32>
    %63 = vector.broadcast %62 : vector<1x8xf32> to vector<64x8xf32>
    %64 = arith.mulf %61, %63 : vector<64x8xf32>
    %c0_93 = arith.constant 0 : index
    %c0_94 = arith.constant 0 : index
    %65 = vector.load %arg4[%c0_93, %c0_94] : memref<1x8xf32, #tpu.memory_space<vmem>>, vector<1x8xf32>
    %66 = vector.broadcast %65 : vector<1x8xf32> to vector<64x8xf32>
    %67 = arith.addf %64, %66 : vector<64x8xf32>
    %cst_95 = arith.constant 0.000000e+00 : f32
    %68 = vector.broadcast %cst_95 : f32 to vector<64x8xf32>
    %69 = arith.maximumf %67, %68 : vector<64x8xf32>
    %70 = vector.shape_cast %69 : vector<64x8xf32> to vector<1x8x8x8xf32>
    %71 = arith.truncf %70 : vector<1x8x8x8xf32> to vector<1x8x8x8xbf16>
    %cst_96 = arith.constant 0.000000e+00 : bf16
    %72 = vector.broadcast %cst_96 : bf16 to vector<1x1x10x8xbf16>
    %cst_97 = arith.constant 0.000000e+00 : bf16
    %73 = vector.broadcast %cst_97 : bf16 to vector<1x8x1x8xbf16>
    %c0_98 = arith.constant 0 : index
    %c0_99 = arith.constant 0 : index
    %c0_100 = arith.constant 0 : index
    %c0_101 = arith.constant 0 : index
    %74 = vector.load %arg10[%c0_98, %c0_99, %c0_100, %c0_101] : memref<1x10x10x8xbf16, #tpu.memory_space<vmem>>, vector<1x1x10x8xbf16>
    tpu.vector_store %arg10[%c0_98, %c0_99, %c0_100, %c0_101], %72 {strides = array<i32>} : memref<1x10x10x8xbf16, #tpu.memory_space<vmem>>, vector<1x1x10x8xbf16>,
    %c0_102 = arith.constant 0 : index
    %c9_103 = arith.constant 9 : index
    %c0_104 = arith.constant 0 : index
    %c0_105 = arith.constant 0 : index
    %75 = vector.load %arg10[%c0_102, %c9_103, %c0_104, %c0_105] : memref<1x10x10x8xbf16, #tpu.memory_space<vmem>>, vector<1x1x10x8xbf16>
    tpu.vector_store %arg10[%c0_102, %c9_103, %c0_104, %c0_105], %72 {strides = array<i32>} : memref<1x10x10x8xbf16, #tpu.memory_space<vmem>>, vector<1x1x10x8xbf16>,
    %c0_106 = arith.constant 0 : index
    %c1_107 = arith.constant 1 : index
    %c0_108 = arith.constant 0 : index
    %c0_109 = arith.constant 0 : index
    %76 = vector.load %arg10[%c0_106, %c1_107, %c0_108, %c0_109] : memref<1x10x10x8xbf16, #tpu.memory_space<vmem>>, vector<1x8x1x8xbf16>
    tpu.vector_store %arg10[%c0_106, %c1_107, %c0_108, %c0_109], %73 {strides = array<i32>} : memref<1x10x10x8xbf16, #tpu.memory_space<vmem>>, vector<1x8x1x8xbf16>,
    %c0_110 = arith.constant 0 : index
    %c1_111 = arith.constant 1 : index
    %c9_112 = arith.constant 9 : index
    %c0_113 = arith.constant 0 : index
    %77 = vector.load %arg10[%c0_110, %c1_111, %c9_112, %c0_113] : memref<1x10x10x8xbf16, #tpu.memory_space<vmem>>, vector<1x8x1x8xbf16>
    tpu.vector_store %arg10[%c0_110, %c1_111, %c9_112, %c0_113], %73 {strides = array<i32>} : memref<1x10x10x8xbf16, #tpu.memory_space<vmem>>, vector<1x8x1x8xbf16>,
    %c0_114 = arith.constant 0 : index
    %c1_115 = arith.constant 1 : index
    %c1_116 = arith.constant 1 : index
    %c0_117 = arith.constant 0 : index
    %78 = vector.load %arg10[%c0_114, %c1_115, %c1_116, %c0_117] : memref<1x10x10x8xbf16, #tpu.memory_space<vmem>>, vector<1x8x8x8xbf16>
    tpu.vector_store %arg10[%c0_114, %c1_115, %c1_116, %c0_117], %71 {strides = array<i32>} : memref<1x10x10x8xbf16, #tpu.memory_space<vmem>>, vector<1x8x8x8xbf16>,
    %c0_118 = arith.constant 0 : index
    %c0_119 = arith.constant 0 : index
    %c0_120 = arith.constant 0 : index
    %c0_121 = arith.constant 0 : index
    %79 = vector.load %arg10[%c0_118, %c0_119, %c0_120, %c0_121] : memref<1x10x10x8xbf16, #tpu.memory_space<vmem>>, vector<1x8x8x8xbf16>
    %80 = vector.shape_cast %79 : vector<1x8x8x8xbf16> to vector<64x8xbf16>
    %c0_122 = arith.constant 0 : index
    %c0_123 = arith.constant 0 : index
    %81 = vector.load %arg5[%c0_122, %c0_123] : memref<72x8xbf16, #tpu.memory_space<vmem>>, vector<8x8xbf16>
    %cst_124 = arith.constant dense<0.000000e+00> : vector<64x8xf32>
    %82 = tpu.matmul %80, %81, %cst_124 {dimension_numbers = #tpu.dot_dimension_numbers<[1], [0], [0], [1], [0, 0, 1, 1], [], []>} : vector<64x8xbf16>, vector<8x8xbf16>, vector<64x8xf32> -> vector<64x8xf32>
    %c0_125 = arith.constant 0 : index
    %c0_126 = arith.constant 0 : index
    %c1_127 = arith.constant 1 : index
    %c0_128 = arith.constant 0 : index
    %83 = vector.load %arg10[%c0_125, %c0_126, %c1_127, %c0_128] : memref<1x10x10x8xbf16, #tpu.memory_space<vmem>>, vector<1x8x8x8xbf16>
    %84 = vector.shape_cast %83 : vector<1x8x8x8xbf16> to vector<64x8xbf16>
    %c8_129 = arith.constant 8 : index
    %c0_130 = arith.constant 0 : index
    %85 = vector.load %arg5[%c8_129, %c0_130] : memref<72x8xbf16, #tpu.memory_space<vmem>>, vector<8x8xbf16>
    %cst_131 = arith.constant dense<0.000000e+00> : vector<64x8xf32>
    %86 = tpu.matmul %84, %85, %cst_131 {dimension_numbers = #tpu.dot_dimension_numbers<[1], [0], [0], [1], [0, 0, 1, 1], [], []>} : vector<64x8xbf16>, vector<8x8xbf16>, vector<64x8xf32> -> vector<64x8xf32>
    %87 = arith.addf %82, %86 : vector<64x8xf32>
    %c0_132 = arith.constant 0 : index
    %c0_133 = arith.constant 0 : index
    %c2_134 = arith.constant 2 : index
    %c0_135 = arith.constant 0 : index
    %88 = vector.load %arg10[%c0_132, %c0_133, %c2_134, %c0_135] : memref<1x10x10x8xbf16, #tpu.memory_space<vmem>>, vector<1x8x8x8xbf16>
    %89 = vector.shape_cast %88 : vector<1x8x8x8xbf16> to vector<64x8xbf16>
    %c16_136 = arith.constant 16 : index
    %c0_137 = arith.constant 0 : index
    %90 = vector.load %arg5[%c16_136, %c0_137] : memref<72x8xbf16, #tpu.memory_space<vmem>>, vector<8x8xbf16>
    %cst_138 = arith.constant dense<0.000000e+00> : vector<64x8xf32>
    %91 = tpu.matmul %89, %90, %cst_138 {dimension_numbers = #tpu.dot_dimension_numbers<[1], [0], [0], [1], [0, 0, 1, 1], [], []>} : vector<64x8xbf16>, vector<8x8xbf16>, vector<64x8xf32> -> vector<64x8xf32>
    %92 = arith.addf %87, %91 : vector<64x8xf32>
    %c0_139 = arith.constant 0 : index
    %c1_140 = arith.constant 1 : index
    %c0_141 = arith.constant 0 : index
    %c0_142 = arith.constant 0 : index
    %93 = vector.load %arg10[%c0_139, %c1_140, %c0_141, %c0_142] : memref<1x10x10x8xbf16, #tpu.memory_space<vmem>>, vector<1x8x8x8xbf16>
    %94 = vector.shape_cast %93 : vector<1x8x8x8xbf16> to vector<64x8xbf16>
    %c24_143 = arith.constant 24 : index
    %c0_144 = arith.constant 0 : index
    %95 = vector.load %arg5[%c24_143, %c0_144] : memref<72x8xbf16, #tpu.memory_space<vmem>>, vector<8x8xbf16>
    %cst_145 = arith.constant dense<0.000000e+00> : vector<64x8xf32>
    %96 = tpu.matmul %94, %95, %cst_145 {dimension_numbers = #tpu.dot_dimension_numbers<[1], [0], [0], [1], [0, 0, 1, 1], [], []>} : vector<64x8xbf16>, vector<8x8xbf16>, vector<64x8xf32> -> vector<64x8xf32>
    %97 = arith.addf %92, %96 : vector<64x8xf32>
    %c0_146 = arith.constant 0 : index
    %c1_147 = arith.constant 1 : index
    %c1_148 = arith.constant 1 : index
    %c0_149 = arith.constant 0 : index
    %98 = vector.load %arg10[%c0_146, %c1_147, %c1_148, %c0_149] : memref<1x10x10x8xbf16, #tpu.memory_space<vmem>>, vector<1x8x8x8xbf16>
    %99 = vector.shape_cast %98 : vector<1x8x8x8xbf16> to vector<64x8xbf16>
    %c32_150 = arith.constant 32 : index
    %c0_151 = arith.constant 0 : index
    %100 = vector.load %arg5[%c32_150, %c0_151] : memref<72x8xbf16, #tpu.memory_space<vmem>>, vector<8x8xbf16>
    %cst_152 = arith.constant dense<0.000000e+00> : vector<64x8xf32>
    %101 = tpu.matmul %99, %100, %cst_152 {dimension_numbers = #tpu.dot_dimension_numbers<[1], [0], [0], [1], [0, 0, 1, 1], [], []>} : vector<64x8xbf16>, vector<8x8xbf16>, vector<64x8xf32> -> vector<64x8xf32>
    %102 = arith.addf %97, %101 : vector<64x8xf32>
    %c0_153 = arith.constant 0 : index
    %c1_154 = arith.constant 1 : index
    %c2_155 = arith.constant 2 : index
    %c0_156 = arith.constant 0 : index
    %103 = vector.load %arg10[%c0_153, %c1_154, %c2_155, %c0_156] : memref<1x10x10x8xbf16, #tpu.memory_space<vmem>>, vector<1x8x8x8xbf16>
    %104 = vector.shape_cast %103 : vector<1x8x8x8xbf16> to vector<64x8xbf16>
    %c40 = arith.constant 40 : index
    %c0_157 = arith.constant 0 : index
    %105 = vector.load %arg5[%c40, %c0_157] : memref<72x8xbf16, #tpu.memory_space<vmem>>, vector<8x8xbf16>
    %cst_158 = arith.constant dense<0.000000e+00> : vector<64x8xf32>
    %106 = tpu.matmul %104, %105, %cst_158 {dimension_numbers = #tpu.dot_dimension_numbers<[1], [0], [0], [1], [0, 0, 1, 1], [], []>} : vector<64x8xbf16>, vector<8x8xbf16>, vector<64x8xf32> -> vector<64x8xf32>
    %107 = arith.addf %102, %106 : vector<64x8xf32>
    %c0_159 = arith.constant 0 : index
    %c2_160 = arith.constant 2 : index
    %c0_161 = arith.constant 0 : index
    %c0_162 = arith.constant 0 : index
    %108 = vector.load %arg10[%c0_159, %c2_160, %c0_161, %c0_162] : memref<1x10x10x8xbf16, #tpu.memory_space<vmem>>, vector<1x8x8x8xbf16>
    %109 = vector.shape_cast %108 : vector<1x8x8x8xbf16> to vector<64x8xbf16>
    %c48 = arith.constant 48 : index
    %c0_163 = arith.constant 0 : index
    %110 = vector.load %arg5[%c48, %c0_163] : memref<72x8xbf16, #tpu.memory_space<vmem>>, vector<8x8xbf16>
    %cst_164 = arith.constant dense<0.000000e+00> : vector<64x8xf32>
    %111 = tpu.matmul %109, %110, %cst_164 {dimension_numbers = #tpu.dot_dimension_numbers<[1], [0], [0], [1], [0, 0, 1, 1], [], []>} : vector<64x8xbf16>, vector<8x8xbf16>, vector<64x8xf32> -> vector<64x8xf32>
    %112 = arith.addf %107, %111 : vector<64x8xf32>
    %c0_165 = arith.constant 0 : index
    %c2_166 = arith.constant 2 : index
    %c1_167 = arith.constant 1 : index
    %c0_168 = arith.constant 0 : index
    %113 = vector.load %arg10[%c0_165, %c2_166, %c1_167, %c0_168] : memref<1x10x10x8xbf16, #tpu.memory_space<vmem>>, vector<1x8x8x8xbf16>
    %114 = vector.shape_cast %113 : vector<1x8x8x8xbf16> to vector<64x8xbf16>
    %c56 = arith.constant 56 : index
    %c0_169 = arith.constant 0 : index
    %115 = vector.load %arg5[%c56, %c0_169] : memref<72x8xbf16, #tpu.memory_space<vmem>>, vector<8x8xbf16>
    %cst_170 = arith.constant dense<0.000000e+00> : vector<64x8xf32>
    %116 = tpu.matmul %114, %115, %cst_170 {dimension_numbers = #tpu.dot_dimension_numbers<[1], [0], [0], [1], [0, 0, 1, 1], [], []>} : vector<64x8xbf16>, vector<8x8xbf16>, vector<64x8xf32> -> vector<64x8xf32>
    %117 = arith.addf %112, %116 : vector<64x8xf32>
    %c0_171 = arith.constant 0 : index
    %c2_172 = arith.constant 2 : index
    %c2_173 = arith.constant 2 : index
    %c0_174 = arith.constant 0 : index
    %118 = vector.load %arg10[%c0_171, %c2_172, %c2_173, %c0_174] : memref<1x10x10x8xbf16, #tpu.memory_space<vmem>>, vector<1x8x8x8xbf16>
    %119 = vector.shape_cast %118 : vector<1x8x8x8xbf16> to vector<64x8xbf16>
    %c64 = arith.constant 64 : index
    %c0_175 = arith.constant 0 : index
    %120 = vector.load %arg5[%c64, %c0_175] : memref<72x8xbf16, #tpu.memory_space<vmem>>, vector<8x8xbf16>
    %cst_176 = arith.constant dense<0.000000e+00> : vector<64x8xf32>
    %121 = tpu.matmul %119, %120, %cst_176 {dimension_numbers = #tpu.dot_dimension_numbers<[1], [0], [0], [1], [0, 0, 1, 1], [], []>} : vector<64x8xbf16>, vector<8x8xbf16>, vector<64x8xf32> -> vector<64x8xf32>
    %122 = arith.addf %117, %121 : vector<64x8xf32>
    %c0_177 = arith.constant 0 : index
    %c0_178 = arith.constant 0 : index
    %123 = vector.load %arg6[%c0_177, %c0_178] : memref<1x8xf32, #tpu.memory_space<vmem>>, vector<1x8xf32>
    %124 = vector.broadcast %123 : vector<1x8xf32> to vector<64x8xf32>
    %125 = arith.mulf %122, %124 : vector<64x8xf32>
    %c0_179 = arith.constant 0 : index
    %c0_180 = arith.constant 0 : index
    %126 = vector.load %arg7[%c0_179, %c0_180] : memref<1x8xf32, #tpu.memory_space<vmem>>, vector<1x8xf32>
    %127 = vector.broadcast %126 : vector<1x8xf32> to vector<64x8xf32>
    %128 = arith.addf %125, %127 : vector<64x8xf32>
    %cst_181 = arith.constant 0.000000e+00 : f32
    %129 = vector.broadcast %cst_181 : f32 to vector<64x8xf32>
    %130 = arith.maximumf %128, %129 : vector<64x8xf32>
    %131 = vector.shape_cast %130 : vector<64x8xf32> to vector<1x64x8xf32>
    %132 = arith.truncf %131 : vector<1x64x8xf32> to vector<1x64x8xbf16>
    %c0_182 = arith.constant 0 : index
    %c0_183 = arith.constant 0 : index
    %c0_184 = arith.constant 0 : index
    %133 = vector.load %arg8[%c0_182, %c0_183, %c0_184] : memref<1x64x8xbf16, #tpu.memory_space<vmem>>, vector<1x64x8xbf16>
    tpu.vector_store %arg8[%c0_182, %c0_183, %c0_184], %132 {strides = array<i32>} : memref<1x64x8xbf16, #tpu.memory_space<vmem>>, vector<1x64x8xbf16>,
    return
  }
  func.func @transform_0(%arg0: i32) -> (i32, i32, i32, i32, i32) {
    %c0_i32 = arith.constant 0 : i32
    %c0_i32_0 = arith.constant 0 : i32
    %c0_i32_1 = arith.constant 0 : i32
    %c0_i32_2 = arith.constant 0 : i32
    %c0_i32_3 = arith.constant 0 : i32
    return %arg0, %c0_i32, %c0_i32_0, %c0_i32_1, %c0_i32_2 : i32, i32, i32, i32, i32
  }
  func.func @transform_1(%arg0: i32) -> (i32, i32) {
    %c0_i32 = arith.constant 0 : i32
    %c0_i32_0 = arith.constant 0 : i32
    %c0_i32_1 = arith.constant 0 : i32
    return %c0_i32, %c0_i32_0 : i32, i32
  }
  func.func @transform_2(%arg0: i32) -> (i32, i32) {
    %c0_i32 = arith.constant 0 : i32
    %c0_i32_0 = arith.constant 0 : i32
    %c0_i32_1 = arith.constant 0 : i32
    return %c0_i32, %c0_i32_0 : i32, i32
  }
  func.func @transform_3(%arg0: i32) -> (i32, i32) {
    %c0_i32 = arith.constant 0 : i32
    %c0_i32_0 = arith.constant 0 : i32
    %c0_i32_1 = arith.constant 0 : i32
    return %c0_i32, %c0_i32_0 : i32, i32
  }
  func.func @transform_4(%arg0: i32) -> (i32, i32) {
    %c0_i32 = arith.constant 0 : i32
    %c0_i32_0 = arith.constant 0 : i32
    %c0_i32_1 = arith.constant 0 : i32
    return %c0_i32, %c0_i32_0 : i32, i32
  }
  func.func @transform_5(%arg0: i32) -> (i32, i32) {
    %c0_i32 = arith.constant 0 : i32
    %c0_i32_0 = arith.constant 0 : i32
    %c0_i32_1 = arith.constant 0 : i32
    return %c0_i32, %c0_i32_0 : i32, i32
  }
  func.func @transform_6(%arg0: i32) -> (i32, i32) {
    %c0_i32 = arith.constant 0 : i32
    %c0_i32_0 = arith.constant 0 : i32
    %c0_i32_1 = arith.constant 0 : i32
    return %c0_i32, %c0_i32_0 : i32, i32
  }
  func.func @transform_7(%arg0: i32) -> (i32, i32, i32) {
    %c0_i32 = arith.constant 0 : i32
    %c0_i32_0 = arith.constant 0 : i32
    %c0_i32_1 = arith.constant 0 : i32
    return %arg0, %c0_i32, %c0_i32_0 : i32, i32, i32
  }
}

</mosaic_0001>

<bundles_post_ra>
// kernel: tpu_custom_call.1
= control target key start
LH: loop header
LB: loop body
LE: loop exit
PB: predicated region body
PF: predicated region fallthrough
CT: control target
= control target key end

     0   :  { %s4690_s24 = smov 0   ;;  %s5655_s0 = inlined_call_operand.vmem [shape: bf16[2,4,8,8,4], index: 0, kind: input, shape index: {}]   ;;  %s5656_s1 = inlined_call_operand.vmem [shape: bf16[36,8], index: 1, kind: input, shape index: {}]   ;;  %s5657_s2 = inlined_call_operand.vmem [shape: f32[1,8], index: 2, kind: input, shape index: {}]   ;;  %s5658_s3 = inlined_call_operand.vmem [shape: f32[1,8], index: 3, kind: input, shape index: {}]   ;;  %s5659_s4 = inlined_call_operand.vmem [shape: bf16[72,8], index: 4, kind: input, shape index: {}]   ;;  %s5660_s5 = inlined_call_operand.vmem [shape: f32[1,8], index: 5, kind: input, shape index: {}]   ;;  %s5661_s6 = inlined_call_operand.vmem [shape: f32[1,8], index: 6, kind: input, shape index: {}]   ;;  %s5662_s7 = inlined_call_operand.vmem [shape: bf16[2,64,8], index: 7, kind: output, shape index: {}]  }
   0x1 LB: > { %s3920_s25 = sadd.s32 4294967295, %s4647_s24   ;;  %p3924_p0 = scmp.ge.s32.totalorder %s4647_s24, 1  ;;  %s4647_s24 = sphi %s4690_s24, %s17_s24  }
   0x2   : > { %p237_p1 = scmp.lt.s32.totalorder %s4647_s24, 3 }
   0x4   : > { %p238_p2 = pnand %p3924_p0, %p237_p1 }
   0x5   : > { %v4614_v0 = vld [vmem:[%s5656_s1] ss:$0 sps:$4 sm:$0xcc] (!%p238_p2)   ;;  %vm692_vm0 = vcmask (!%p238_p2), 1041408   ;;  %p269_p3 = scmp.lt.s32.totalorder (!%p238_p2), %s3920_s25, 1  ;;  %vm339_vm1 = vcmask (!%p238_p2), 27648  }
   0x6   : > { %241 = sbr.rel (%p238_p2) target bundleno = 818 (0x332), region = 48  ;;  %vm341_vm2 = vcmask (!%p238_p2), 24576   ;;  %vm348_vm3 = vsmask.f32 (!%p238_p2), 256  ;;  %v678_v1 = vrot.slane (!%p238_p2), %v4614_v0, 2  ;;  %v4649_v2 = vmov (!%p238_p2), 0  }
   0x7   : > { %340 = vst.msk [vmem:[#allocation2] sm:$0xf] (!%p238_p2), %vm339_vm1, %v4649_v2  ;;  %vm4705_vm4 = vmand (!%p238_p2), %vm341_vm2, %vm348_vm3  ;;  %v350_v4 = vld [vmem:[#allocation2 + $0x8] sm:$0x1] (!%p238_p2)  ;;  %vm374_vm5 = vsmask.f32 (!%p238_p2), 7938 }
   0x8   : > { %342 = vst.msk [vmem:[#allocation2 + $0x4] sm:$0x1] (!%p238_p2), %vm341_vm2, %v4649_v2  ;;  %345 = vst.msk [vmem:[#allocation2 + $0x4c] sm:$0x1] (!%p238_p2), %vm341_vm2, %v4649_v2  ;;  %v351_v5 = vsel (!%p238_p2), %vm4705_vm4, 0, %v350_v4  ;;  %4587 = vmatprep.subr.msk.bf16.mxu0 (!%p238_p2), %vm692_vm0, %v678_v1  ;;  %v694_v8 = vsel (!%p238_p2), %vm692_vm0, %v678_v1, 0 }
   0x9   : > { %344 = vst.msk [vmem:[#allocation2 + $0x48] sm:$0xf] (!%p238_p2), %vm339_vm1, %v4649_v2  ;;  %vm4717_vm6 = vmand (!%p238_p2), %vm341_vm2, %vm374_vm5  ;;  %v376_v7 = vld [vmem:[#allocation2 + $0xc] sm:$0x1] (!%p238_p2)  ;;  %v4728_v10 = vld [vmem:[%s5656_s1] sm:$0x3] (!%p238_p2)  ;;  %4280 = vmatpush3.bf16.msra.mxu0 (!%p238_p2), %v694_v8 }
   0xa   : > { %352 = vst [vmem:[#allocation2 + $0x8] sm:$0x1] (!%p238_p2), %v351_v5  ;;  %v377_v9 = vsel (!%p238_p2), %vm4717_vm6, 0, %v376_v7  ;;  %v353_v11 = vld [vmem:[#allocation2 + $0x10] sm:$0x1] (!%p238_p2)  ;;  %4588 = vmatprep.subr.msk.bf16.mxu0 (!%p238_p2), %vm692_vm0, %v4728_v10  ;;  %vm4769_vm7 = vmand (!%p238_p2), %vm339_vm1, %vm374_vm5  ;;  %vm679_vm11 = vcmask (!%p238_p2), 31744  }
   0xb   : > { %378 = vst [vmem:[#allocation2 + $0xc] sm:$0x1] (!%p238_p2), %v377_v9  ;;  %v356_v12 = vld [vmem:[#allocation2 + $0x18] sm:$0x1] (!%p238_p2)  ;;  %v354_v13 = vsel (!%p238_p2), %vm4705_vm4, 0, %v353_v11  ;;  %vm885_vm12 = vcmask (!%p238_p2), 1042432  }
   0xc   : > { %v357_v14 = vsel (!%p238_p2), %vm4705_vm4, 0, %v356_v12  ;;  %355 = vst [vmem:[#allocation2 + $0x10] sm:$0x1] (!%p238_p2), %v354_v13  ;;  %v379_v18 = vld [vmem:[#allocation2 + $0x14] sm:$0x1] (!%p238_p2)  ;;  %vm886_vm13 = vcmask (!%p238_p2), 1046532  }
   0xd   : > { %s5680_s25 = smov (!%p269_p3, %s3920_s25), 1  ;;  %358 = vst [vmem:[#allocation2 + $0x18] sm:$0x1] %v357_v14  ;;  %v382_v30 = vld [vmem:[#allocation2 + $0x1c] sm:$0x1]  ;;  %v380_v39 = vsel %vm4717_vm6, 0, %v379_v18  ;;  %vm4947_vm14 = vmor %vm885_vm12, %vm886_vm13 }
   0xe   : > { %s4171_s30 = sshll.u32 %s5680_s25, 7  ;;  %v4748_v24 = vld [vmem:[#allocation2] sm:$0xf]  ;;  %381 = vst [vmem:[#allocation2 + $0x14] sm:$0x1] %v380_v39  ;;  %v383_v49 = vsel %vm4717_vm6, 0, %v382_v30 }
   0xf   : > { %s4734_s10 = scalar_lea.vmem %s5655_s0, %s4171_s30  ;;  %v4750_v25 = vld [vmem:[#allocation2 + $0x4] sm:$0x1]  ;;  %v551_v27 = vshrl.u32 %v4748_v24, 16  ;;  %v554_v28 = vshll.u32 %v4748_v24, 16  ;;  %384 = vst [vmem:[#allocation2 + $0x1c] sm:$0x1] %v383_v49 }
  0x10   : > { %v280_v15 = vld [vmem:[%s4734_s10] sm:$0xf]  ;;  %v281_v21 = vld [vmem:[%s4734_s10 + $0x4] sm:$0xf]  ;;  %v282_v22 = vld [vmem:[%s4734_s10 + $0x8] sm:$0xf] }
  0x11   : > { %v3929_v16 = vld [vmem:[%s4734_s10 + $0x20] sm:$0xf]  ;;  %v3930_v26 = vld [vmem:[%s4734_s10 + $0x24] sm:$0xf]  ;;  %v3931_v29 = vld [vmem:[%s4734_s10 + $0x28] sm:$0xf] }
  0x12   : > { %v3937_v17 = vld [vmem:[%s4734_s10 + $0x40] sm:$0xf]  ;;  %v297_v19 = vmax.bf16 %v3929_v16, %v280_v15  ;;  %v560_v32 = vshll.u32 %v4750_v25, 16  ;;  %v298_v33 = vmax.bf16 %v3930_v26, %v281_v21  ;;  %v3938_v34 = vld [vmem:[%s4734_s10 + $0x44] sm:$0xf]  ;;  %v553_v36 = vrot.slane %v551_v27, 4 }
  0x13   : > { %v3945_v20 = vld [vmem:[%s4734_s10 + $0x60] sm:$0xf]  ;;  %v3939_v35 = vld [vmem:[%s4734_s10 + $0x48] sm:$0xf]  ;;  %v556_v37 = vrot.slane %v554_v28, 5  ;;  %v299_v38 = vmax.bf16 %v3931_v29, %v282_v22  ;;  %vm2088_vm15 = vcmask 57344  }
  0x14   : > { %v323_v23 = vmax.bf16 %v3945_v20, %v3937_v17  ;;  %v3946_v42 = vld [vmem:[%s4734_s10 + $0x64] sm:$0xf]  ;;  %v3947_v43 = vld [vmem:[%s4734_s10 + $0x68] sm:$0xf]  ;;  %v485_v45 = vld [vmem:[#allocation2 + $0xc] sm:$0x1] }
  0x15   : > { %v482_v44 = vld [vmem:[#allocation2 + $0x8] sm:$0xf]  ;;  %v557_v46 = vor.u32 %v556_v37, %v553_v36  ;;  %v324_v47 = vmax.bf16 %v3946_v42, %v3938_v34  ;;  %v325_v48 = vmax.bf16 %v3947_v43, %v3939_v35  ;;  %v283_v51 = vld [vmem:[%s4734_s10 + $0xc] sm:$0xf]  ;;  %v284_v52 = vld [vmem:[%s4734_s10 + $0x10] sm:$0xf] }
  0x16   : > { %v331_v31 = vmax.bf16 %v323_v23, %v297_v19  ;;  %v4773_v54 = vrot.slane %v560_v32, 5  ;;  %v3932_v57 = vld [vmem:[%s4734_s10 + $0x2c] sm:$0xf]  ;;  %v3933_v58 = vld [vmem:[%s4734_s10 + $0x30] sm:$0xf]  ;;  %vm5172_vm1 = vmand %vm2088_vm15, %vm348_vm3  ;;  %vm2454_vm3 = vcmask 1043456  }
  0x17   : > { %v332_v55 = vmax.bf16 %v324_v47, %v298_v33  ;;  %v333_v56 = vmax.bf16 %v325_v48, %v299_v38  ;;  %vm547_vm8 = vsmask.f32 3328  ;;  %vm548_vm9 = vsmask.f32 7440  ;;  %v3940_v63 = vld [vmem:[%s4734_s10 + $0x4c] sm:$0xf]  ;;  %vm5180_vm2 = vmand %vm2088_vm15, %vm374_vm5 }
  0x18   : > { %v401_v40 = vshrl.u32 %v331_v31, 16  ;;  %v404_v41 = vshll.u32 %v331_v31, 16  ;;  %v4777_v61 = vrot.slane %v557_v46, 4  ;;  %v300_v62 = vmax.bf16 %v3932_v57, %v283_v51  ;;  %v3941_v0 = vld [vmem:[%s4734_s10 + $0x50] sm:$0xf]  ;;  %vm4821_vm10 = vmor %vm547_vm8, %vm548_vm9  ;;  %s4172_s9 = sshll.u32 %s5680_s25, 5 }
  0x19   : > { %v409_v1 = vshrl.u32 %v332_v55, 16  ;;  %v412_v4 = vshll.u32 %v332_v55, 16  ;;  %v417_v5 = vshrl.u32 %v333_v56, 16  ;;  %v301_v7 = vmax.bf16 %v3933_v58, %v284_v52  ;;  %v3948_v8 = vld [vmem:[%s4734_s10 + $0x6c] sm:$0xf]  ;;  %s5634_s12 = scalar_lea.vmem %s5662_s7, %s4172_s9 }
  0x1a   : > { %v403_v50 = vrot.slane %v401_v40, 7  ;;  %v420_v12 = vshll.u32 %v333_v56, 16  ;;  %v488_v13 = vld [vmem:[#allocation2 + $0x10] sm:$0xf]  ;;  %v494_v14 = vld [vmem:[#allocation2 + $0x18] sm:$0xf]  ;;  %v326_v16 = vmax.bf16 %v3948_v8, %v3940_v63 }
  0x1b   : > { %v3949_v15 = vld [vmem:[%s4734_s10 + $0x70] sm:$0xf]  ;;  %v359_v17 = vld [vmem:[#allocation2 + $0x20] sm:$0x1]  ;;  %v411_v18 = vrot.slane %v409_v1, 7  ;;  %v419_v19 = vrot.slane %v417_v5, 7 }
  0x1c   : > { %v406_v59 = vor.u32 %v404_v41, %v403_v50  ;;  %v407_v60 = vrot.slane %v403_v50, 4  ;;  %v491_v20 = vld [vmem:[#allocation2 + $0x14] sm:$0x1]  ;;  %v327_v21 = vmax.bf16 %v3949_v15, %v3941_v0  ;;  %v360_v22 = vsel %vm4705_vm4, 0, %v359_v17  ;;  %v362_v26 = vld [vmem:[#allocation2 + $0x28] sm:$0x1] }
  0x1d   : > { %v334_v23 = vmax.bf16 %v326_v16, %v300_v62  ;;  %361 = vst [vmem:[#allocation2 + $0x20] sm:$0x1] %v360_v22  ;;  %v385_v27 = vld [vmem:[#allocation2 + $0x24] sm:$0x1]  ;;  %v388_v28 = vld [vmem:[#allocation2 + $0x2c] sm:$0x1]  ;;  %v414_v29 = vor.u32 %v412_v4, %v411_v18  ;;  %v422_v31 = vor.u32 %v420_v12, %v419_v19  ;;  %v563_v15 = vsel %vm4821_vm10, %v4777_v61, %v4773_v54 }
  0x1e   : > { %v483_v9 = vsel %vm4769_vm7, %v406_v59, %v482_v44  ;;  %v486_v11 = vsel %vm4705_vm4, %v407_v60, %v485_v45  ;;  %v415_v30 = vrot.slane %v411_v18, 4  ;;  %v423_v32 = vrot.slane %v419_v19, 4  ;;  %v497_v33 = vld [vmem:[#allocation2 + $0x1c] sm:$0x1]  ;;  %v4804_v42 = vld [vmem:[%s4734_s10 + $0x14] sm:$0xf] }
  0x1f   : > { %484 = vst [vmem:[#allocation2 + $0x8] sm:$0xf] %v483_v9  ;;  %487 = vst [vmem:[#allocation2 + $0xc] sm:$0x1] %v486_v11  ;;  %v335_v34 = vmax.bf16 %v327_v21, %v301_v7  ;;  %v363_v35 = vsel %vm4705_vm4, 0, %v362_v26  ;;  %v386_v36 = vsel %vm4717_vm6, 0, %v385_v27  ;;  %v489_v38 = vsel %vm4769_vm7, %v414_v29, %v488_v13 }
  0x20   : > { %v389_v37 = vsel %vm4717_vm6, 0, %v388_v28  ;;  %v492_v39 = vsel %vm4705_vm4, %v415_v30, %v491_v20  ;;  %v495_v40 = vsel %vm4769_vm7, %v422_v31, %v494_v14  ;;  %v498_v41 = vsel %vm4705_vm4, %v423_v32, %v497_v33  ;;  %364 = vst [vmem:[#allocation2 + $0x28] sm:$0x1] %v363_v35  ;;  %387 = vst [vmem:[#allocation2 + $0x24] sm:$0x1] %v386_v36 }
  0x21   : > { %390 = vst [vmem:[#allocation2 + $0x2c] sm:$0x1] %v389_v37  ;;  %v4807_v43 = vld [vmem:[%s4734_s10 + $0x34] sm:$0xf]  ;;  %490 = vst [vmem:[#allocation2 + $0x10] sm:$0xf] %v489_v38 }
  0x22   : > { %493 = vst [vmem:[#allocation2 + $0x14] sm:$0x1] %v492_v39  ;;  %496 = vst [vmem:[#allocation2 + $0x18] sm:$0xf] %v495_v40  ;;  %v425_v44 = vshrl.u32 %v334_v23, 16  ;;  %v428_v45 = vshll.u32 %v334_v23, 16  ;;  %v302_v4 = vmax.bf16 %v4807_v43, %v4804_v42 }
  0x23   : > { %499 = vst [vmem:[#allocation2 + $0x1c] sm:$0x1] %v498_v41  ;;  %v433_v46 = vshrl.u32 %v335_v34, 16  ;;  %v436_v47 = vshll.u32 %v335_v34, 16  ;;  %v3942_v48 = vld [vmem:[%s4734_s10 + $0x54] sm:$0xf] }
  0x24   : > { %v286_v49 = vld [vmem:[%s4734_s10 + $0x18] sm:$0xf]  ;;  %v3950_v52 = vld [vmem:[%s4734_s10 + $0x74] sm:$0xf]  ;;  %v427_v58 = vrot.slane %v425_v44, 7 }
  0x25   : > { %v3935_v50 = vld [vmem:[%s4734_s10 + $0x38] sm:$0xf]  ;;  %v435_v59 = vrot.slane %v433_v46, 7  ;;  %v500_v1 = vld [vmem:[#allocation2 + $0x20] sm:$0xf]  ;;  %v328_v14 = vmax.bf16 %v3950_v52, %v3942_v48 }
  0x26   : > { %v3943_v51 = vld [vmem:[%s4734_s10 + $0x58] sm:$0xf]  ;;  %v4815_v56 = vld [vmem:[#allocation2 + $0x8] sm:$0xf]  ;;  %v4817_v57 = vld [vmem:[#allocation2 + $0xc] sm:$0x1]  ;;  %v430_v5 = vor.u32 %v428_v45, %v427_v58  ;;  %v303_v20 = vmax.bf16 %v3935_v50, %v286_v49 }
  0x27   : > { %v3951_v55 = vld [vmem:[%s4734_s10 + $0x78] sm:$0xf]  ;;  %v565_v62 = vshrl.u32 %v4815_v56, 16  ;;  %v568_v63 = vshll.u32 %v4815_v56, 16  ;;  %v574_v0 = vshll.u32 %v4817_v57, 16  ;;  %v431_v7 = vrot.slane %v427_v58, 4 }
  0x28   : > { %v438_v8 = vor.u32 %v436_v47, %v435_v59  ;;  %v439_v9 = vrot.slane %v435_v59, 4  ;;  %v501_v16 = vsel %vm4769_vm7, %v430_v5, %v500_v1  ;;  %v503_v17 = vld [vmem:[#allocation2 + $0x24] sm:$0x1]  ;;  %v506_v18 = vld [vmem:[#allocation2 + $0x28] sm:$0xf]  ;;  %v329_v21 = vmax.bf16 %v3951_v55, %v3943_v51 }
  0x29   : > { %v567_v11 = vrot.slane %v565_v62, 4  ;;  %v570_v12 = vrot.slane %v568_v63, 5  ;;  %v576_v13 = vrot.slane %v574_v0, 5  ;;  %v509_v19 = vld [vmem:[#allocation2 + $0x2c] sm:$0x1]  ;;  %v504_v28 = vsel %vm4705_vm4, %v431_v7, %v503_v17 }
  0x2a   : > { %v4836_v23 = vld [vmem:[#allocation2 + $0x10] sm:$0xf]  ;;  %v4838_v26 = vld [vmem:[#allocation2 + $0x18] sm:$0xf]  ;;  %v4840_v27 = vld [vmem:[#allocation2 + $0x14] sm:$0x1]  ;;  %v507_v54 = vsel %vm4769_vm7, %v438_v8, %v506_v18  ;;  %v510_v61 = vsel %vm4705_vm4, %v439_v9, %v509_v19  ;;  %v336_v39 = vmax.bf16 %v328_v14, %v302_v4  ;;  %v337_v44 = vmax.bf16 %v329_v21, %v303_v20 }
  0x2b   : > { %v571_v22 = vor.u32 %v570_v12, %v567_v11  ;;  %502 = vst [vmem:[#allocation2 + $0x20] sm:$0xf] %v501_v16  ;;  %v365_v29 = vld [vmem:[#allocation2 + $0x30] sm:$0x1]  ;;  %v368_v30 = vld [vmem:[#allocation2 + $0x38] sm:$0x1]  ;;  %v3963_v53 = vcombine.low %v4836_v23, %v4838_v26 }
  0x2c   : > { %v4848_v31 = vld [vmem:[#allocation2 + $0x1c] sm:$0x1]  ;;  %v579_v32 = vshrl.u32 %v4836_v23, 16  ;;  %v582_v33 = vshll.u32 %v4836_v23, 16  ;;  %v588_v34 = vshll.u32 %v4840_v27, 16  ;;  %v593_v35 = vshrl.u32 %v4838_v26, 16 }
  0x2d   : > { %505 = vst [vmem:[#allocation2 + $0x24] sm:$0x1] %v504_v28  ;;  %508 = vst [vmem:[#allocation2 + $0x28] sm:$0xf] %v507_v54  ;;  %v572_v36 = vrot.slane %v571_v22, 4  ;;  %v596_v37 = vshll.u32 %v4838_v26, 16 }
  0x2e   : > { %511 = vst [vmem:[#allocation2 + $0x2c] sm:$0x1] %v510_v61  ;;  %v602_v38 = vshll.u32 %v4848_v31, 16  ;;  %v391_v40 = vld [vmem:[#allocation2 + $0x34] sm:$0x1]  ;;  %v581_v41 = vrot.slane %v579_v32, 4 }
  0x2f   : > { %v584_v42 = vrot.slane %v582_v33, 5  ;;  %v595_v43 = vrot.slane %v593_v35, 4  ;;  %v394_v45 = vld [vmem:[#allocation2 + $0x3c] sm:$0x1]  ;;  %v577_v46 = vsel %vm4821_vm10, %v572_v36, %v576_v13  ;;  %v590_v47 = vrot.slane %v588_v34, 5 }
  0x30   : > { %v598_v48 = vrot.slane %v596_v37, 5  ;;  %v604_v49 = vrot.slane %v602_v38, 5  ;;  %v3953_v50 = vcombine.low %v563_v15, %v577_v46  ;;  %v366_v52 = vsel %vm4705_vm4, 0, %v365_v29  ;;  %v4890_v33 = vld [vmem:[%s5656_s1 + $0x4] sm:$0x3] }
  0x31   : > { %v585_v51 = vor.u32 %v584_v42, %v581_v41  ;;  %v369_v55 = vsel %vm4705_vm4, 0, %v368_v30  ;;  %367 = vst [vmem:[#allocation2 + $0x30] sm:$0x1] %v366_v52  ;;  %v392_v59 = vsel %vm4717_vm6, 0, %v391_v40  ;;  %v395_v62 = vsel %vm4717_vm6, 0, %v394_v45 }
  0x32   : > { %v599_v58 = vor.u32 %v598_v48, %v595_v43  ;;  %370 = vst [vmem:[#allocation2 + $0x38] sm:$0x1] %v369_v55  ;;  %v441_v63 = vshrl.u32 %v336_v39, 16  ;;  %4281 = vmatprep.mubr.msk.bf16.mxu0 %vm679_vm11, %v3953_v50  ;;  %v4867_v1 = vld [vmem:[#allocation2 + $0x20] sm:$0xf]  ;;  %v444_v4 = vshll.u32 %v336_v39, 16 }
  0x33   : > { %v586_v0 = vrot.slane %v585_v51, 4  ;;  %393 = vst [vmem:[#allocation2 + $0x34] sm:$0x1] %v392_v59  ;;  %396 = vst [vmem:[#allocation2 + $0x3c] sm:$0x1] %v395_v62  ;;  %v449_v5 = vshrl.u32 %v337_v44, 16 }
  0x34   : > { %v452_v7 = vshll.u32 %v337_v44, 16  ;;  %v600_v8 = vrot.slane %v599_v58, 4  ;;  %v4869_v9 = vld [vmem:[#allocation2 + $0x28] sm:$0xf]  ;;  %v4871_v11 = vld [vmem:[#allocation2 + $0x24] sm:$0x1] }
  0x35   : > { %v607_v12 = vshrl.u32 %v4867_v1, 16  ;;  %v591_v13 = vsel %vm4821_vm10, %v586_v0, %v590_v47  ;;  %v4876_v14 = vld [vmem:[#allocation2 + $0x2c] sm:$0x1]  ;;  %v610_v15 = vshll.u32 %v4867_v1, 16  ;;  %v616_v16 = vshll.u32 %v4871_v11, 16 }
  0x36   : > { %v621_v17 = vshrl.u32 %v4869_v9, 16  ;;  %v605_v18 = vsel %vm4821_vm10, %v600_v8, %v604_v49  ;;  %v624_v20 = vshll.u32 %v4869_v9, 16  ;;  %v630_v21 = vshll.u32 %v4876_v14, 16  ;;  %v287_v58 = vld [vmem:[%s4734_s10 + $0x1c] sm:$0xf] }
  0x37   : > { %v609_v19 = vrot.slane %v607_v12, 4  ;;  %v3954_v22 = vcombine.low %v591_v13, %v605_v18  ;;  %v794_v28 = vsel %vm692_vm0, %v4728_v10, 0  ;;  %v612_v54 = vrot.slane %v610_v15, 5  ;;  %v3936_v59 = vld [vmem:[%s4734_s10 + $0x3c] sm:$0xf] }
  0x38   : > { %v623_v61 = vrot.slane %v621_v17, 4  ;;  %v626_v29 = vrot.slane %v624_v20, 5  ;;  %v443_v30 = vrot.slane %v441_v63, 7  ;;  %v451_v32 = vrot.slane %v449_v5, 7  ;;  %v512_v37 = vld [vmem:[#allocation2 + $0x30] sm:$0xf] }
  0x39   : > { %4282 = vmatmul.mubr.msk.bf16.vlgmr.msra.gmra.mrb[0].mxu0 %vm679_vm11, %v3954_v22  ;;  %v613_v34 = vor.u32 %v612_v54, %v609_v19  ;;  %v618_v35 = vrot.slane %v616_v16, 5  ;;  %v632_v36 = vrot.slane %v630_v21, 5  ;;  %v518_v38 = vld [vmem:[#allocation2 + $0x38] sm:$0xf]  ;;  %v304_v62 = vmax.bf16 %v3936_v59, %v287_v58  ;;  %v3944_v63 = vld [vmem:[%s4734_s10 + $0x5c] sm:$0xf] }
  0x3a   : > { %4290 = vmatpush3.bf16.msra.mxu0 %v794_v28  ;;  %v627_v39 = vor.u32 %v626_v29, %v623_v61  ;;  %v446_v10 = vor.u32 %v444_v4, %v443_v30  ;;  %v447_v40 = vrot.slane %v443_v30, 4  ;;  %v454_v41 = vor.u32 %v452_v7, %v451_v32  ;;  %v515_v42 = vld [vmem:[#allocation2 + $0x34] sm:$0x1]  ;;  %v521_v43 = vld [vmem:[#allocation2 + $0x3c] sm:$0x1] }
  0x3b   : > { %v614_v44 = vrot.slane %v613_v34, 4  ;;  %v455_v45 = vrot.slane %v451_v32, 4  ;;  %4589 = vmatprep.subr.msk.bf16.mxu0 %vm692_vm0, %v4890_v33  ;;  %v3952_v0 = vld [vmem:[%s4734_s10 + $0x7c] sm:$0xf]  ;;  %v371_v5 = vld [vmem:[#allocation2 + $0x40] sm:$0x1] }
  0x3c   : > { %v628_v46 = vrot.slane %v627_v39, 4  ;;  %v513_v47 = vsel %vm4769_vm7, %v446_v10, %v512_v37  ;;  %v516_v48 = vsel %vm4705_vm4, %v447_v40, %v515_v42  ;;  %v519_v49 = vsel %vm4769_vm7, %v454_v41, %v518_v38  ;;  %v397_v58 = vld [vmem:[#allocation2 + $0x44] sm:$0x1]  ;;  %v863_v26 = vld [vmem:[#allocation2 + $0x10] sm:$0xe] }
  0x3d   : > { %v619_v50 = vsel %vm4821_vm10, %v614_v44, %v618_v35  ;;  %514 = vst [vmem:[#allocation2 + $0x30] sm:$0xf] %v513_v47  ;;  %517 = vst [vmem:[#allocation2 + $0x34] sm:$0x1] %v516_v48  ;;  %v522_v51 = vsel %vm4705_vm4, %v455_v45, %v521_v43  ;;  %v330_v4 = vmax.bf16 %v3952_v0, %v3944_v63  ;;  %v372_v7 = vsel %vm4705_vm4, 0, %v371_v5 }
  0x3e   : > { %520 = vst [vmem:[#allocation2 + $0x38] sm:$0xf] %v519_v49  ;;  %v633_v52 = vsel %vm4821_vm10, %v628_v46, %v632_v36  ;;  %523 = vst [vmem:[#allocation2 + $0x3c] sm:$0x1] %v522_v51  ;;  %v3962_v44 = vcombine.low %v4748_v24, %v4815_v56  ;;  %v861_v47 = vld [vmem:[#allocation2] sm:$0xe] }
  0x3f   : > { %v3955_v55 = vcombine.low %v619_v50, %v633_v52  ;;  %v338_v15 = vmax.bf16 %v330_v4, %v304_v62  ;;  %373 = vst [vmem:[#allocation2 + $0x40] sm:$0x1] %v372_v7  ;;  %v862_v48 = vld [vmem:[#allocation2 + $0x8] sm:$0xe]  ;;  %v890_v50 = vrot.slane %v4750_v25, 5  ;;  %v894_v24 = vrot.slane %v4817_v57, 5 }
  0x40   : > { %v4618_v49 = vld [vmem:[%s5656_s1 + $0x4] ss:$0 sps:$4 sm:$0xcc]   ;;  %v3970_v56 = vrot.slane %v861_v47, 9  ;;  %v3971_v51 = vrot.slane %v862_v48, 9  ;;  %v3964_v52 = vcombine.low %v4867_v1, %v4869_v9  ;;  %v946_v59 = vsel %vm692_vm0, %v4890_v33, 0 }
  0x41   : > { %4285 = vmatprep.mubr.msk.bf16.mxu0 %vm679_vm11, %v3955_v55  ;;  %v457_v34 = vshrl.u32 %v338_v15, 16  ;;  %v460_v37 = vshll.u32 %v338_v15, 16  ;;  %v1053_v62 = vrot.slane %v4618_v49, 2  ;;  %v398_v23 = vsel %vm4717_vm6, 0, %v397_v58  ;;  %v864_v1 = vld [vmem:[#allocation2 + $0x18] sm:$0xe] }
  0x42   : > { %v891_v25 = vsel %vm4947_vm14, %v3970_v56, %v890_v50  ;;  %v895_v57 = vsel %vm4947_vm14, %v3971_v51, %v894_v24  ;;  %v865_v9 = vld [vmem:[#allocation2 + $0x20] sm:$0xe]  ;;  %399 = vst [vmem:[#allocation2 + $0x44] sm:$0x1] %v398_v23  ;;  %v866_v33 = vld [vmem:[#allocation2 + $0x28] sm:$0xe] }
  0x43   : > { %v459_v39 = vrot.slane %v457_v34, 7  ;;  %v898_v63 = vrot.slane %v4840_v27, 5  ;;  %v902_v0 = vrot.slane %v4848_v31, 5  ;;  %v3978_v4 = vcombine.low %v891_v25, %v895_v57  ;;  %v1270_v3 = vld [vmem:[%s5656_s1 + $0x8] sm:$0x3] }
  0x44   : > { %v4914_v8 = vld [vmem:[#allocation2 + $0x30] sm:$0xf]  ;;  %v4918_v13 = vld [vmem:[#allocation2 + $0x34] sm:$0x1]  ;;  %v3972_v6 = vrot.slane %v863_v26, 9  ;;  %v3973_v7 = vrot.slane %v864_v1, 9 }
  0x45   : > { %v4916_v12 = vld [vmem:[#allocation2 + $0x38] sm:$0xf]  ;;  %v4920_v16 = vld [vmem:[#allocation2 + $0x3c] sm:$0x1]  ;;  %v635_v17 = vshrl.u32 %v4914_v8, 16  ;;  %v638_v18 = vshll.u32 %v4914_v8, 16  ;;  %v462_v42 = vor.u32 %v460_v37, %v459_v39 }
  0x46   : > { %v644_v19 = vshll.u32 %v4918_v13, 16  ;;  %v649_v20 = vshrl.u32 %v4916_v12, 16  ;;  %v652_v21 = vshll.u32 %v4916_v12, 16  ;;  %v658_v22 = vshll.u32 %v4920_v16, 16  ;;  %v524_v40 = vld [vmem:[#allocation2 + $0x40] sm:$0xf] }
  0x47   : > { %v637_v28 = vrot.slane %v635_v17, 4  ;;  %v640_v54 = vrot.slane %v638_v18, 5  ;;  %v525_v46 = vsel %vm4769_vm7, %v462_v42, %v524_v40  ;;  %v3965_v5 = vcombine.low %v4914_v8, %v4916_v12  ;;  %v867_v12 = vld [vmem:[#allocation2 + $0x30] sm:$0xe]  ;;  %v4993_v40 = vld [vmem:[#allocation2 + $0xc] sm:$0x1] }
  0x48   : > { %v651_v61 = vrot.slane %v649_v20, 4  ;;  %v654_v29 = vrot.slane %v652_v21, 5  ;;  %v646_v32 = vrot.slane %v644_v19, 5  ;;  %v660_v36 = vrot.slane %v658_v22, 5  ;;  %526 = vst [vmem:[#allocation2 + $0x40] sm:$0xf] %v525_v46 }
  0x49   : > { %v641_v30 = vor.u32 %v640_v54, %v637_v28  ;;  %v3974_v15 = vrot.slane %v865_v9, 9  ;;  %v906_v17 = vrot.slane %v4871_v11, 5  ;;  %v3975_v18 = vrot.slane %v866_v33, 9  ;;  %v527_v21 = vld [vmem:[#allocation2 + $0x44] sm:$0x1] }
  0x4a   : > { %v655_v35 = vor.u32 %v654_v29, %v651_v61  ;;  %v910_v19 = vrot.slane %v4876_v14, 5  ;;  %v463_v20 = vrot.slane %v459_v39, 4  ;;  %v899_v27 = vsel %vm4947_vm14, %v3972_v6, %v898_v63  ;;  %v868_v22 = vld [vmem:[#allocation2 + $0x38] sm:$0xe]  ;;  %v1142_v61 = vld [vmem:[#allocation2 + $0x8] sm:$0xf] }
  0x4b   : > { %v642_v38 = vrot.slane %v641_v30, 4  ;;  %v903_v31 = vsel %vm4947_vm14, %v3973_v7, %v902_v0  ;;  %v907_v8 = vsel %vm4947_vm14, %v3974_v15, %v906_v17  ;;  %v1144_v29 = vld [vmem:[#allocation2 + $0x10] sm:$0xf]  ;;  %v3976_v30 = vrot.slane %v867_v12, 9  ;;  %v1146_v47 = vld [vmem:[#allocation2 + $0x18] sm:$0xf] }
  0x4c   : > { %v656_v10 = vrot.slane %v655_v35, 4  ;;  %v911_v11 = vsel %vm4947_vm14, %v3975_v18, %v910_v19  ;;  %v528_v14 = vsel %vm4705_vm4, %v463_v20, %v527_v21  ;;  %v3979_v28 = vcombine.low %v899_v27, %v903_v31  ;;  %v4619_v48 = vld [vmem:[#allocation2 + $0x8] ss:$8 sps:$4 sm:$0xff]   ;;  %v1148_v49 = vld [vmem:[#allocation2 + $0x20] sm:$0xf] }
  0x4d   : > { %v647_v41 = vsel %vm4821_vm10, %v642_v38, %v646_v32  ;;  %529 = vst [vmem:[#allocation2 + $0x44] sm:$0x1] %v528_v14  ;;  %v3980_v54 = vcombine.low %v907_v8, %v911_v11  ;;  %v914_v32 = vrot.slane %v4918_v13, 5  ;;  %v3977_v34 = vrot.slane %v868_v22, 9  ;;  %v1150_v51 = vld [vmem:[#allocation2 + $0x28] sm:$0xf] }
  0x4e   : > { %v661_v43 = vsel %vm4821_vm10, %v656_v10, %v660_v36  ;;  %v918_v35 = vrot.slane %v4920_v16, 5  ;;  %v1067_v36 = vsel %vm692_vm0, %v1053_v62, 0  ;;  %v1159_v37 = vshrl.u32 %v1142_v61, 16  ;;  %v5004_v57 = vld [vmem:[%s5656_s1 + $0x8] ss:$0 sps:$4 sm:$0xcc]  }
  0x4f   : > { %v3956_v45 = vcombine.low %v647_v41, %v661_v43  ;;  %v1162_v38 = vshll.u32 %v1142_v61, 16  ;;  %v1173_v39 = vshrl.u32 %v1144_v29, 16  ;;  %v1176_v10 = vshll.u32 %v1144_v29, 16  ;;  %v4620_v23 = vld [vmem:[#allocation2 + $0x18] ss:$8 sps:$4 sm:$0xff]  }
  0x50   : > { %v915_v13 = vsel %vm4947_vm14, %v3976_v30, %v914_v32  ;;  %v919_v16 = vsel %vm4947_vm14, %v3977_v34, %v918_v35  ;;  %v1161_v41 = vrot.slane %v1159_v37, 4  ;;  %v1168_v50 = vshll.u32 %v4993_v40, 16  ;;  %v4621_v63 = vld [vmem:[#allocation2 + $0x28] ss:$8 sps:$4 sm:$0xff]   ;;  %v5006_v15 = vld [vmem:[#allocation2 + $0x1c] sm:$0x1] }
  0x51   : > { %4286 = vmatmul.mubr.msk.bf16.gmra.mrb[4].mxu0 %vm679_vm11, %v3956_v45  ;;  %v1164_v42 = vrot.slane %v1162_v38, 5  ;;  %v3981_v43 = vcombine.low %v915_v13, %v919_v16  ;;  %v1175_v45 = vrot.slane %v1173_v39, 4  ;;  %v1178_v46 = vrot.slane %v1176_v10, 5  ;;  %v5010_v21 = vld [vmem:[#allocation2 + $0x24] sm:$0x1] }
  0x52   : > { %4291 = vmatprep.mubr.msk.bf16.mxu0 %vm679_vm11, %v3962_v44  ;;  %v4995_v44 = vld [vmem:[#allocation2 + $0x14] sm:$0x1]  ;;  %v1187_v56 = vshrl.u32 %v1146_v47, 16  ;;  %v1204_v25 = vshll.u32 %v1148_v49, 16  ;;  %v1215_v26 = vshrl.u32 %v1150_v51, 16  ;;  %v1218_v1 = vshll.u32 %v1150_v51, 16 }
  0x53   : > { %v1165_v24 = vor.u32 %v1164_v42, %v1161_v41  ;;  %v1179_v58 = vor.u32 %v1178_v46, %v1175_v45  ;;  %v1296_v20 = vsel %vm692_vm0, %v1270_v3, 0  ;;  %v1443_v27 = vrot.slane %v5004_v57, 2  ;;  %v1154_v31 = vld [vmem:[#allocation2 + $0x38] sm:$0xf]  ;;  %v1156_v22 = vld [vmem:[#allocation2 + $0x40] sm:$0xf] }
  0x54   : > { %v1189_v6 = vrot.slane %v1187_v56, 4  ;;  %v1206_v19 = vrot.slane %v1204_v25, 5  ;;  %v1217_v8 = vrot.slane %v1215_v26, 4  ;;  %v1220_v11 = vrot.slane %v1218_v1, 5  ;;  %v5015_v61 = vld [vmem:[#allocation2 + $0x2c] sm:$0x1] }
  0x55   : > { %v1166_v0 = vrot.slane %v1165_v24, 4  ;;  %v1180_v7 = vrot.slane %v1179_v58, 4  ;;  %v5017_v29 = vld [vmem:[#allocation2 + $0x34] sm:$0x1]  ;;  %v1210_v35 = vshll.u32 %v5010_v21, 16  ;;  %v1257_v37 = vshrl.u32 %v1156_v22, 16 }
  0x56   : > { %v1260_v38 = vshll.u32 %v1156_v22, 16  ;;  %v1221_v39 = vor.u32 %v1220_v11, %v1217_v8  ;;  %v1224_v10 = vshll.u32 %v5015_v61, 16  ;;  %v1238_v16 = vshll.u32 %v5017_v29, 16  ;;  %v4622_v42 = vld [vmem:[#allocation2 + $0x38] ss:$8 sps:$4 sm:$0xff]  }
  0x57   : > { %v1259_v24 = vrot.slane %v1257_v37, 4  ;;  %v1401_v11 = vrot.slane %v4995_v44, 5  ;;  %v1373_v22 = vld [vmem:[#allocation2 + $0x18] sm:$0xe]  ;;  %v1409_v37 = vrot.slane %v5010_v21, 5 }
  0x58   : > { %v1222_v56 = vrot.slane %v1221_v39, 4  ;;  %v1226_v51 = vrot.slane %v1224_v10, 5  ;;  %v1240_v58 = vrot.slane %v1238_v16, 5  ;;  %v1413_v39 = vrot.slane %v5015_v61, 5  ;;  %2092 = vst.msk [vmem:[#allocation3 + $0x4c] sm:$0x1] %vm2088_vm15, %v4649_v2 }
  0x59   : > { %4292 = vmatmul.mubr.msk.bf16.vlgmr.msra.gmra.mrb[0].mxu0 %vm679_vm11, %v3963_v53  ;;  %v1182_v53 = vshll.u32 %v4995_v44, 16  ;;  %2089 = vst.msk [vmem:[#allocation3 + $0x4] sm:$0x1] %vm2088_vm15, %v4649_v2 }
  0x5a   : > { %4300 = vmatpush3.bf16.msra.mxu0 %v946_v59  ;;  %4295 = vmatprep.mubr.msk.bf16.mxu0 %vm679_vm11, %v3964_v52  ;;  %v1152_v52 = vld [vmem:[#allocation2 + $0x30] sm:$0xf]  ;;  %v1190_v59 = vshll.u32 %v1146_v47, 16  ;;  %v1212_v47 = vrot.slane %v1210_v35, 5 }
  0x5b   : > { %4590 = vmatprep.subr.msk.bf16.mxu0 %vm692_vm0, %v1053_v62  ;;  %v1201_v62 = vshrl.u32 %v1148_v49, 16  ;;  %v1229_v9 = vshrl.u32 %v1152_v52, 16  ;;  %v1232_v33 = vshll.u32 %v1152_v52, 16 }
  0x5c   : > { %v1192_v17 = vrot.slane %v1190_v59, 5  ;;  %v5029_v59 = vld [vmem:[#allocation2 + $0x44] sm:$0x1] }
  0x5d   : > { %v1203_v18 = vrot.slane %v1201_v62, 4  ;;  %v1231_v14 = vrot.slane %v1229_v9, 4  ;;  %v1234_v12 = vrot.slane %v1232_v33, 5  ;;  %v1266_v1 = vshll.u32 %v5029_v59, 16 }
  0x5e   : > { %v1193_v32 = vor.u32 %v1192_v17, %v1189_v6  ;;  %v1227_v9 = vsel %vm4821_vm10, %v1222_v56, %v1226_v51 }
  0x5f   : > { %v1207_v34 = vor.u32 %v1206_v19, %v1203_v18  ;;  %v1235_v13 = vor.u32 %v1234_v12, %v1231_v14  ;;  %v1268_v19 = vrot.slane %v1266_v1, 5  ;;  %v1541_v14 = vld [vmem:[%s5656_s1 + $0xc] sm:$0x3] }
  0x60   : > { %v1194_v45 = vrot.slane %v1193_v32, 4  ;;  %v1575_v56 = vsel %vm692_vm0, %v1541_v14, 0 }
  0x61   : > { %4296 = vmatmul.mubr.msk.bf16.gmra.mrb[4].mxu0 %vm679_vm11, %v3965_v5  ;;  %v1184_v5 = vrot.slane %v1182_v53, 5  ;;  %v1208_v46 = vrot.slane %v1207_v34, 4  ;;  %v1262_v53 = vrot.slane %v1260_v38, 5  ;;  %v1236_v52 = vrot.slane %v1235_v13, 4 }
  0x62   : > { %4301 = vmatprep.mubr.msk.bf16.mxu0 %vm679_vm11, %v3978_v4  ;;  %v1170_v4 = vrot.slane %v1168_v50, 5  ;;  %v4005_v34 = vrot.slane %v1373_v22, 9  ;;  %v1417_v13 = vrot.slane %v5017_v29, 5  ;;  %v4625_v29 = vld [vmem:[%s5656_s1 + $0xc] ss:$0 sps:$4 sm:$0xcc]  }
  0x63   : > { %v1185_v30 = vsel %vm4821_vm10, %v1180_v7, %v1184_v5  ;;  %v1213_v57 = vsel %vm4821_vm10, %v1208_v46, %v1212_v47  ;;  %v1263_v26 = vor.u32 %v1262_v53, %v1259_v24  ;;  %v1241_v33 = vsel %vm4821_vm10, %v1236_v52, %v1240_v58  ;;  %v1650_v46 = vld [vmem:[#allocation2 + $0x10] sm:$0xf]  ;;  %v1652_v53 = vld [vmem:[#allocation2 + $0x18] sm:$0xf] }
  0x64   : > { %v1457_v5 = vsel %vm692_vm0, %v1443_v27, 0  ;;  %v3997_v7 = vcombine.low %v1227_v9, %v1241_v33  ;;  %v1425_v24 = vrot.slane %v5029_v59, 5  ;;  %v1794_v51 = vrot.slane %v4625_v29, 2  ;;  %v5087_v59 = vld [vmem:[#allocation2 + $0x14] sm:$0x1] }
  0x65   : > { %v1264_v18 = vrot.slane %v1263_v26, 4  ;;  %v1667_v52 = vshrl.u32 %v1650_v46, 16  ;;  %v1670_v58 = vshll.u32 %v1650_v46, 16  ;;  %v5089_v9 = vld [vmem:[#allocation2 + $0x1c] sm:$0x1] }
  0x66   : > { %v5108_v46 = vld [vmem:[#allocation2 + $0x3c] sm:$0x1] }
  0x67   : > { %v1269_v12 = vsel %vm4821_vm10, %v1264_v18, %v1268_v19  ;;  %v1672_v26 = vrot.slane %v1670_v58, 5  ;;  %v1658_v19 = vld [vmem:[#allocation2 + $0x30] sm:$0xf] }
  0x68   : > { %v1723_v22 = vshrl.u32 %v1658_v19, 16 }
  0x69   : > { %4302 = vmatmul.mubr.msk.bf16.vlgmr.msra.gmra.mrb[0].mxu0 %vm679_vm11, %v3979_v28  ;;  %v1171_v28 = vsel %vm4821_vm10, %v1166_v0, %v1170_v4  ;;  %v1372_v0 = vld [vmem:[#allocation2 + $0x10] sm:$0xe] }
  0x6a   : > { %4310 = vmatpush3.bf16.msra.mxu0 %v1067_v36  ;;  %4305 = vmatprep.mubr.msk.bf16.mxu0 %vm679_vm11, %v3980_v54  ;;  %v1196_v54 = vshll.u32 %v5006_v15, 16  ;;  %v1243_v36 = vshrl.u32 %v1154_v31, 16  ;;  %v4004_v8 = vrot.slane %v1372_v0, 9  ;;  %v1654_v0 = vld [vmem:[#allocation2 + $0x20] sm:$0xf] }
  0x6b   : > { %4591 = vmatprep.subr.msk.bf16.mxu0 %vm692_vm0, %v1270_v3  ;;  %v1246_v3 = vshll.u32 %v1154_v31, 16  ;;  %v1397_v31 = vrot.slane %v4993_v40, 5  ;;  %v1695_v18 = vshrl.u32 %v1654_v0, 16 }
  0x6c   : > { %v1198_v41 = vrot.slane %v1196_v54, 5  ;;  %v1245_v49 = vrot.slane %v1243_v36, 4  ;;  %v1402_v44 = vsel %vm4947_vm14, %v4004_v8, %v1401_v11  ;;  %v1375_v54 = vld [vmem:[#allocation2 + $0x28] sm:$0xe]  ;;  %v1405_v36 = vrot.slane %v5006_v15, 5 }
  0x6d   : > { %v1248_v50 = vrot.slane %v1246_v3, 5  ;;  %v4007_v38 = vrot.slane %v1375_v54, 9  ;;  %v1377_v15 = vld [vmem:[#allocation2 + $0x38] sm:$0xe]  ;;  %v1698_v8 = vshll.u32 %v1654_v0, 16 }
  0x6e   : > { %v1199_v62 = vsel %vm4821_vm10, %v1194_v45, %v1198_v41  ;;  %v1406_v16 = vsel %vm4947_vm14, %v4005_v34, %v1405_v36  ;;  %v4009_v45 = vrot.slane %v1377_v15, 9  ;;  %v4627_v54 = vld [vmem:[#allocation2 + $0x30] ss:$8 sps:$4 sm:$0xff]   ;;  %v5118_v0 = vld [vmem:[#allocation2 + $0x44] sm:$0x1] }
  0x6f   : > { %v3996_v4 = vcombine.low %v1199_v62, %v1213_v57  ;;  %v1414_v21 = vsel %vm4947_vm14, %v4007_v38, %v1413_v39  ;;  %v1681_v62 = vshrl.u32 %v1652_v53, 16 }
  0x71   : > { %4306 = vmatmul.mubr.msk.bf16.gmra.mrb[4].mxu0 %vm679_vm11, %v3981_v43  ;;  %v3995_v43 = vcombine.low %v1171_v28, %v1185_v30  ;;  %v1374_v28 = vld [vmem:[#allocation2 + $0x20] sm:$0xe]  ;;  %v1376_v30 = vld [vmem:[#allocation2 + $0x30] sm:$0xe]  ;;  %v1683_v33 = vrot.slane %v1681_v62, 4 }
  0x72   : > { %4311 = vmatprep.mubr.msk.bf16.mxu0 %vm679_vm11, %v4619_v48  ;;  %v5027_v48 = vld [vmem:[#allocation2 + $0x3c] sm:$0x1]  ;;  %v4006_v3 = vrot.slane %v1374_v28, 9  ;;  %v4008_v10 = vrot.slane %v1376_v30, 9 }
  0x73   : > { %v1252_v25 = vshll.u32 %v5027_v48, 16 }
  0x74   : > { %v1410_v41 = vsel %vm4947_vm14, %v4006_v3, %v1409_v37  ;;  %v1418_v61 = vsel %vm4947_vm14, %v4008_v10, %v1417_v13  ;;  %v5096_v3 = vld [vmem:[#allocation2 + $0x24] sm:$0x1]  ;;  %v1700_v37 = vrot.slane %v1698_v8, 5  ;;  %v1939_v10 = vld [vmem:[%s5656_s1 + $0x10] sm:$0x3] }
  0x75   : > { %v1254_v6 = vrot.slane %v1252_v25, 5  ;;  %v4013_v47 = vcombine.low %v1414_v21, %v1418_v61  ;;  %v1684_v25 = vshll.u32 %v1652_v53, 16  ;;  %v5101_v13 = vld [vmem:[#allocation2 + $0x2c] sm:$0x1] }
  0x79   : > { %4312 = vmatmul.mubr.msk.bf16.vlgmr.msra.gmra.mrb[0].mxu0 %vm679_vm11, %v4620_v23  ;;  %v1249_v23 = vor.u32 %v1248_v50, %v1245_v49  ;;  %v1421_v49 = vrot.slane %v5027_v48, 5 }
  0x7a   : > { %4320 = vmatpush3.bf16.msra.mxu0 %v1296_v20  ;;  %4315 = vmatprep.mubr.msk.bf16.mxu0 %vm679_vm11, %v4621_v63  ;;  %v1371_v63 = vld [vmem:[#allocation2 + $0x8] sm:$0xe] }
  0x7b   : > { %4592 = vmatprep.subr.msk.bf16.mxu0 %vm692_vm0, %v1443_v27  ;;  %v1250_v17 = vrot.slane %v1249_v23, 4  ;;  %v4003_v20 = vrot.slane %v1371_v63, 9  ;;  %v1422_v57 = vsel %vm4947_vm14, %v4009_v45, %v1421_v49  ;;  %v1669_v23 = vrot.slane %v1667_v52, 4  ;;  %v5106_v45 = vld [vmem:[#allocation2 + $0x34] sm:$0x1] }
  0x7c   : > { %v1686_v63 = vrot.slane %v1684_v25, 5  ;;  %v1732_v62 = vshll.u32 %v5106_v45, 16 }
  0x7d   : > { %v1255_v27 = vsel %vm4821_vm10, %v1250_v17, %v1254_v6  ;;  %v1398_v40 = vsel %vm4947_vm14, %v4003_v20, %v1397_v31  ;;  %v1676_v6 = vshll.u32 %v5087_v59, 16  ;;  %v1690_v17 = vshll.u32 %v5089_v9, 16  ;;  %v1660_v20 = vld [vmem:[#allocation2 + $0x38] sm:$0xf] }
  0x7e   : > { %v3998_v32 = vcombine.low %v1255_v27, %v1269_v12  ;;  %v4011_v35 = vcombine.low %v1398_v40, %v1402_v44  ;;  %v1687_v31 = vor.u32 %v1686_v63, %v1683_v33  ;;  %v1808_v27 = vsel %vm692_vm0, %v1794_v51, 0  ;;  %v4626_v12 = vld [vmem:[#allocation2 + $0x20] ss:$8 sps:$4 sm:$0xff]  }
  0x7f   : > { %v1726_v40 = vshll.u32 %v1658_v19, 16  ;;  %v1737_v44 = vshrl.u32 %v1660_v20, 16  ;;  %v1740_v28 = vshll.u32 %v1660_v20, 16  ;;  %v1692_v34 = vrot.slane %v1690_v17, 5 }
  0x80   : > { %v1688_v36 = vrot.slane %v1687_v31, 4  ;;  %v5120_v31 = vld [vmem:[#allocation2 + $0x4c] sm:$0x1] }
  0x81   : > { %4316 = vmatmul.mubr.msk.bf16.gmra.mrb[4].mxu0 %vm679_vm11, %v4622_v42  ;;  %v1378_v42 = vld [vmem:[#allocation2 + $0x40] sm:$0xe]  ;;  %v1728_v15 = vrot.slane %v1726_v40, 5  ;;  %v1739_v21 = vrot.slane %v1737_v44, 4  ;;  %v1742_v61 = vrot.slane %v1740_v28, 5 }
  0x82   : > { %4321 = vmatprep.mubr.msk.bf16.mxu0 %vm679_vm11, %v3995_v43  ;;  %v4012_v43 = vcombine.low %v1406_v16, %v1410_v41  ;;  %v4010_v50 = vrot.slane %v1378_v42, 9  ;;  %v1662_v16 = vld [vmem:[#allocation2 + $0x40] sm:$0xf]  ;;  %v1725_v41 = vrot.slane %v1723_v22, 4  ;;  %v1664_v42 = vld [vmem:[#allocation2 + $0x48] sm:$0xf] }
  0x83   : > { %v1751_v53 = vshrl.u32 %v1662_v16, 16  ;;  %v1768_v52 = vshll.u32 %v1664_v42, 16  ;;  %v1743_v25 = vor.u32 %v1742_v61, %v1739_v21  ;;  %v1774_v22 = vshll.u32 %v5120_v31, 16  ;;  %v1883_v28 = vld [vmem:[#allocation2 + $0x10] sm:$0xe] }
  0x84   : > { %v1426_v48 = vsel %vm4947_vm14, %v4010_v50, %v1425_v24  ;;  %v1718_v24 = vshll.u32 %v5101_v13, 16  ;;  %v1729_v58 = vor.u32 %v1728_v15, %v1725_v41  ;;  %v1913_v15 = vrot.slane %v5089_v9, 5  ;;  %v1885_v61 = vld [vmem:[#allocation2 + $0x20] sm:$0xe]  ;;  %v1887_v9 = vld [vmem:[#allocation2 + $0x30] sm:$0xe] }
  0x85   : > { %v4014_v1 = vcombine.low %v1422_v57, %v1426_v48  ;;  %v1746_v57 = vshll.u32 %v5108_v46, 16  ;;  %v1744_v19 = vrot.slane %v1743_v25, 4 }
  0x86   : > { %v1720_v63 = vrot.slane %v1718_v24, 5  ;;  %v1730_v17 = vrot.slane %v1729_v58, 4  ;;  %v1917_v24 = vrot.slane %v5096_v3, 5 }
  0x87   : > { %v1748_v20 = vrot.slane %v1746_v57, 5 }
  0x89   : > { %4322 = vmatmul.mubr.msk.bf16.vlgmr.msra.gmra.mrb[0].mxu0 %vm679_vm11, %v3996_v4  ;;  %v4624_v4 = vld [vmem:[#allocation2 + $0x10] ss:$8 sps:$4 sm:$0xff]   ;;  %v1749_v44 = vsel %vm4821_vm10, %v1744_v19, %v1748_v20 }
  0x8a   : > { %4330 = vmatpush3.bf16.msra.mxu0 %v1457_v5  ;;  %4325 = vmatprep.mubr.msk.bf16.mxu0 %vm679_vm11, %v3997_v7  ;;  %v1656_v5 = vld [vmem:[#allocation2 + $0x28] sm:$0xf]  ;;  %v1673_v7 = vor.u32 %v1672_v26, %v1669_v23  ;;  %v2096_v20 = vld [vmem:[#allocation3 + $0x8] sm:$0x1] }
  0x8b   : > { %4593 = vmatprep.subr.msk.bf16.mxu0 %vm692_vm0, %v1541_v14  ;;  %v1709_v11 = vshrl.u32 %v1656_v5, 16  ;;  %v1712_v14 = vshll.u32 %v1656_v5, 16  ;;  %v4628_v23 = vld [vmem:[#allocation2 + $0x40] ss:$8 sps:$4 sm:$0xff]  }
  0x8c   : > { %v1674_v30 = vrot.slane %v1673_v7, 4  ;;  %v1770_v7 = vrot.slane %v1768_v52, 5  ;;  %v1925_v52 = vrot.slane %v5106_v45, 5 }
  0x8d   : > { %v1711_v38 = vrot.slane %v1709_v11, 4  ;;  %v1714_v39 = vrot.slane %v1712_v14, 5  ;;  %v1760_v11 = vshll.u32 %v5118_v0, 16 }
  0x8f   : > { %v1715_v50 = vor.u32 %v1714_v39, %v1711_v38  ;;  %v1776_v38 = vrot.slane %v1774_v22, 5  ;;  %v4037_v39 = vrot.slane %v1883_v28, 9  ;;  %v2099_v22 = vld [vmem:[#allocation3 + $0x10] sm:$0x1]  ;;  %v2124_v28 = vld [vmem:[#allocation3 + $0x14] sm:$0x1] }
  0x91   : > { %4326 = vmatmul.mubr.msk.bf16.gmra.mrb[4].mxu0 %vm679_vm11, %v3998_v32  ;;  %v1678_v32 = vrot.slane %v1676_v6, 5  ;;  %v1716_v33 = vrot.slane %v1715_v50, 4 }
  0x92   : > { %4331 = vmatprep.mubr.msk.bf16.mxu0 %vm679_vm11, %v4011_v35  ;;  %v1697_v35 = vrot.slane %v1695_v18, 4  ;;  %v1734_v18 = vrot.slane %v1732_v62, 5  ;;  %v1929_v62 = vrot.slane %v5108_v46, 5 }
  0x93   : > { %v1679_v29 = vsel %vm4821_vm10, %v1674_v30, %v1678_v32  ;;  %v1721_v14 = vsel %vm4821_vm10, %v1716_v33, %v1720_v63  ;;  %v1965_v32 = vsel %vm692_vm0, %v1939_v10, 0  ;;  %v1937_v63 = vrot.slane %v5120_v31, 5  ;;  %v2121_v31 = vld [vmem:[#allocation3 + $0xc] sm:$0x1] }
  0x94   : > { %v1701_v49 = vor.u32 %v1700_v37, %v1697_v35  ;;  %v1735_v40 = vsel %vm4821_vm10, %v1730_v17, %v1734_v18  ;;  %v2127_v17 = vld [vmem:[#allocation3 + $0x1c] sm:$0x1] }
  0x95   : > { %v4030_v35 = vcombine.low %v1735_v40, %v1749_v44  ;;  %v2100_v44 = vsel %vm5172_vm1, 0, %v2099_v22 }
  0x96   : > { %2101 = vst [vmem:[#allocation3 + $0x10] sm:$0x1] %v2100_v44 }
  0x99   : > { %4332 = vmatmul.mubr.msk.bf16.vlgmr.msra.gmra.mrb[0].mxu0 %vm679_vm11, %v4012_v43  ;;  %v1704_v43 = vshll.u32 %v5096_v3, 16  ;;  %v1889_v3 = vld [vmem:[#allocation2 + $0x40] sm:$0xe] }
  0x9a   : > { %4340 = vmatpush3.bf16.msra.mxu0 %v1575_v56  ;;  %4335 = vmatprep.mubr.msk.bf16.mxu0 %vm679_vm11, %v4013_v47  ;;  %v1693_v47 = vsel %vm4821_vm10, %v1688_v36, %v1692_v34  ;;  %v1754_v56 = vshll.u32 %v1662_v16, 16  ;;  %v1762_v34 = vrot.slane %v1760_v11, 5  ;;  %v1909_v16 = vrot.slane %v5087_v59, 5 }
  0x9b   : > { %4594 = vmatprep.subr.msk.bf16.mxu0 %vm692_vm0, %v1794_v51  ;;  %v1765_v51 = vshrl.u32 %v1664_v42, 16  ;;  %v1706_v48 = vrot.slane %v1704_v43, 5  ;;  %v4028_v26 = vcombine.low %v1679_v29, %v1693_v47  ;;  %v1886_v29 = vld [vmem:[#allocation2 + $0x28] sm:$0xe]  ;;  %v1888_v43 = vld [vmem:[#allocation2 + $0x38] sm:$0xe] }
  0x9c   : > { %v1756_v5 = vrot.slane %v1754_v56, 5  ;;  %v1910_v42 = vsel %vm4947_vm14, %v4037_v39, %v1909_v16  ;;  %v1921_v56 = vrot.slane %v5101_v13, 5  ;;  %v4042_v58 = vrot.slane %v1888_v43, 9  ;;  %v2117_v16 = vld [vmem:[#allocation3 + $0x40] sm:$0x1] }
  0x9d   : > { %v1767_v6 = vrot.slane %v1765_v51, 4  ;;  %v4041_v51 = vrot.slane %v1887_v9, 9  ;;  %v4043_v46 = vrot.slane %v1889_v3, 9  ;;  %v2097_v11 = vsel %vm5172_vm1, 0, %v2096_v20  ;;  %v5226_v43 = vld [vmem:[%s5659_s4] sm:$0xf] }
  0x9e   : > { %v1930_v45 = vsel %vm4947_vm14, %v4042_v58, %v1929_v62  ;;  %2098 = vst [vmem:[#allocation3 + $0x8] sm:$0x1] %v2097_v11 }
  0x9f   : > { %v1926_v13 = vsel %vm4947_vm14, %v4041_v51, %v1925_v52 }
  0xa1   : > { %4336 = vmatmul.mubr.msk.bf16.gmra.mrb[4].mxu0 %vm679_vm11, %v4014_v1  ;;  %v1702_v1 = vrot.slane %v1701_v49, 4  ;;  %v4039_v49 = vrot.slane %v1885_v61, 9 }
  0xa2   : > { %4341 = vmatprep.mubr.msk.bf16.mxu0 %vm679_vm11, %v4624_v4  ;;  %v1753_v4 = vrot.slane %v1751_v53, 4  ;;  %v4040_v53 = vrot.slane %v1886_v29, 9  ;;  %v2428_v29 = vld [vmem:[%s5659_s4 + $0x4] sm:$0xf] }
  0xa3   : > { %v1707_v8 = vsel %vm4821_vm10, %v1702_v1, %v1706_v48  ;;  %v1918_v25 = vsel %vm4947_vm14, %v4039_v49, %v1917_v24  ;;  %v1890_v48 = vld [vmem:[#allocation2 + $0x48] sm:$0xe]  ;;  %v1933_v1 = vrot.slane %v5118_v0, 5  ;;  %4596 = vmatprep.subr.msk.bf16.mxu1 %vm2454_vm3, %v2428_v29  ;;  %v2456_v9 = vsel %vm2454_vm3, %v2428_v29, 0  ;;  %v5235_v49 = vld [vmem:[%s5657_s2] ss:$0 sm:$0xff] }
  0xa4   : > { %v4029_v30 = vcombine.low %v1707_v8, %v1721_v14  ;;  %v1922_v57 = vsel %vm4947_vm14, %v4040_v53, %v1921_v56  ;;  %v4044_v33 = vrot.slane %v1890_v48, 9  ;;  %v2128_v8 = vsel %vm5180_vm2, 0, %v2127_v17  ;;  %4370 = vmatpush3.bf16.msra.mxu1 %v2456_v9  ;;  %v5240_v24 = vld [vmem:[%s5658_s3] ss:$0 sm:$0xff] }
  0xa5   : > { %v2122_v14 = vsel %vm5180_vm2, 0, %v2121_v31  ;;  %2129 = vst [vmem:[#allocation3 + $0x1c] sm:$0x1] %v2128_v8  ;;  %4597 = vmatprep.subr.msk.bf16.mxu1 %vm2454_vm3, %v5226_v43 }
  0xa6   : > { %2123 = vst [vmem:[#allocation3 + $0xc] sm:$0x1] %v2122_v14 }
  0xa9   : > { %4342 = vmatmul.mubr.msk.bf16.vlgmr.msra.gmra.mrb[0].mxu0 %vm679_vm11, %v4626_v12  ;;  %v1771_v12 = vor.u32 %v1770_v7, %v1767_v6  ;;  %v2102_v7 = vld [vmem:[#allocation3 + $0x18] sm:$0x1] }
  0xaa   : > { %4350 = vmatpush3.bf16.msra.mxu0 %v1808_v27  ;;  %4345 = vmatprep.mubr.msk.bf16.mxu0 %vm679_vm11, %v4627_v54  ;;  %v1757_v27 = vor.u32 %v1756_v5, %v1753_v4  ;;  %v1884_v54 = vld [vmem:[#allocation2 + $0x18] sm:$0xe]  ;;  %v1934_v4 = vsel %vm4947_vm14, %v4043_v46, %v1933_v1  ;;  %v1938_v5 = vsel %vm4947_vm14, %v4044_v33, %v1937_v63  ;;  %v2103_v18 = vsel %vm5172_vm1, 0, %v2102_v7 }
  0xab   : > { %4595 = vmatprep.subr.msk.bf16.mxu0 %vm692_vm0, %v1939_v10  ;;  %v1772_v37 = vrot.slane %v1771_v12, 4  ;;  %v4038_v41 = vrot.slane %v1884_v54, 9  ;;  %v4048_v6 = vcombine.low %v1934_v4, %v1938_v5  ;;  %vm2086_vm0 = vcmask 60416   ;;  %2104 = vst [vmem:[#allocation3 + $0x18] sm:$0x1] %v2103_v18 }
  0xac   : > { %v1758_v36 = vrot.slane %v1757_v27, 4  ;;  %2087 = vst.msk [vmem:[#allocation3] sm:$0xf] %vm2086_vm0, %v4649_v2  ;;  %2091 = vst.msk [vmem:[#allocation3 + $0x48] sm:$0xf] %vm2086_vm0, %v4649_v2  ;;  %v2125_v54 = vsel %vm5180_vm2, 0, %v2124_v28 }
  0xad   : > { %v1777_v10 = vsel %vm4821_vm10, %v1772_v37, %v1776_v38  ;;  %v1914_v59 = vsel %vm4947_vm14, %v4038_v41, %v1913_v15  ;;  %v2105_v27 = vld [vmem:[#allocation3 + $0x20] sm:$0x1]  ;;  %v2130_v2 = vld [vmem:[#allocation3 + $0x24] sm:$0x1]  ;;  %2126 = vst [vmem:[#allocation3 + $0x14] sm:$0x1] %v2125_v54  ;;  %vm5266_vm4 = vmand %vm2086_vm0, %vm374_vm5 }
  0xae   : > { %v1763_v21 = vsel %vm4821_vm10, %v1758_v36, %v1762_v34  ;;  %v4045_v50 = vcombine.low %v1910_v42, %v1914_v59  ;;  %v2106_v12 = vsel %vm5172_vm1, 0, %v2105_v27  ;;  %v2131_v40 = vsel %vm5180_vm2, 0, %v2130_v2  ;;  %v2108_v36 = vld [vmem:[#allocation3 + $0x28] sm:$0x1]  ;;  %v2133_v37 = vld [vmem:[#allocation3 + $0x2c] sm:$0x1] }
  0xaf   : > { %v4031_v47 = vcombine.low %v1763_v21, %v1777_v10  ;;  %2107 = vst [vmem:[#allocation3 + $0x20] sm:$0x1] %v2106_v12  ;;  %2132 = vst [vmem:[#allocation3 + $0x24] sm:$0x1] %v2131_v40  ;;  %v2109_v38 = vsel %vm5172_vm1, 0, %v2108_v36  ;;  %v2134_v39 = vsel %vm5180_vm2, 0, %v2133_v37 }
  0xb0   : > { %2110 = vst [vmem:[#allocation3 + $0x28] sm:$0x1] %v2109_v38  ;;  %2135 = vst [vmem:[#allocation3 + $0x2c] sm:$0x1] %v2134_v39  ;;  %v2142_v41 = vld [vmem:[#allocation3 + $0x44] sm:$0x1] }
  0xb1   : > { %4346 = vmatmul.mubr.msk.bf16.gmra.mrb[4].mxu0 %vm679_vm11, %v4628_v23  ;;  %v4046_v23 = vcombine.low %v1918_v25, %v1922_v57  ;;  %v2118_v15 = vsel %vm5172_vm1, 0, %v2117_v16  ;;  %v2143_v21 = vsel %vm5180_vm2, 0, %v2142_v41  ;;  %v2111_v10 = vld [vmem:[#allocation3 + $0x30] sm:$0x1]  ;;  %v2136_v42 = vld [vmem:[#allocation3 + $0x34] sm:$0x1] }
  0xb2   : > { %4351 = vmatprep.mubr.msk.bf16.mxu0 %vm679_vm11, %v4028_v26  ;;  %v4047_v26 = vcombine.low %v1926_v13, %v1930_v45  ;;  %2119 = vst [vmem:[#allocation3 + $0x40] sm:$0x1] %v2118_v15  ;;  %2144 = vst [vmem:[#allocation3 + $0x44] sm:$0x1] %v2143_v21  ;;  %v2112_v61 = vsel %vm5172_vm1, 0, %v2111_v10  ;;  %v2137_v59 = vsel %vm5180_vm2, 0, %v2136_v42 }
  0xb3   : > { %2113 = vst [vmem:[#allocation3 + $0x30] sm:$0x1] %v2112_v61  ;;  %2138 = vst [vmem:[#allocation3 + $0x34] sm:$0x1] %v2137_v59  ;;  %v5256_v5 = vld [vmem:[#allocation3 + $0x4] sm:$0x1] }
  0xb4   : > { %v2326_v19 = vshll.u32 %v5256_v5, 16  ;;  %v2263_v27 = vld [vmem:[#allocation3 + $0x18] sm:$0xf]  ;;  %v2266_v12 = vld [vmem:[#allocation3 + $0x1c] sm:$0x1]  ;;  %vm2441_vm5 = vcmask 64512  }
  0xb5   : > { %v2254_v39 = vld [vmem:[#allocation3 + $0xc] sm:$0x1] }
  0xb6   : > { %v2269_v42 = vld [vmem:[#allocation3 + $0x20] sm:$0xf] }
  0xb9   : > { %4352 = vmatmul.mubr.msk.bf16.vlgmr.msra.gmra.mrb[0].mxu0 %vm679_vm11, %v4029_v30  ;;  %v2114_v30 = vld [vmem:[#allocation3 + $0x38] sm:$0x1] }
  0xba   : > { %4360 = vmatpush3.bf16.msra.mxu0 %v1965_v32  ;;  %4355 = vmatprep.mubr.msk.bf16.mxu0 %vm679_vm11, %v4030_v35  ;;  %v2139_v32 = vld [vmem:[#allocation3 + $0x3c] sm:$0x1]  ;;  %v2115_v34 = vsel %vm5172_vm1, 0, %v2114_v30  ;;  %v2251_v30 = vld [vmem:[#allocation3 + $0x8] sm:$0xf] }
  0xbb   : > { %v2140_v35 = vsel %vm5180_vm2, 0, %v2139_v32  ;;  %2116 = vst [vmem:[#allocation3 + $0x38] sm:$0x1] %v2115_v34 }
  0xbc   : > { %2141 = vst [vmem:[#allocation3 + $0x3c] sm:$0x1] %v2140_v35 }
  0xc1   : > { %4356 = vmatmul.mubr.msk.bf16.gmra.mrb[4].mxu0 %vm679_vm11, %v4031_v47  ;;  %v5230_v47 = vld [vmem:[#allocation3] sm:$0xf] }
  0xc2   : > { %4361 = vmatprep.mubr.msk.bf16.mxu0 %vm679_vm11, %v4045_v50  ;;  %v2317_v53 = vshrl.u32 %v5230_v47, 16  ;;  %v2320_v56 = vshll.u32 %v5230_v47, 16 }
  0xc4   : > { %v5250_v48 = vrot.slane %v2317_v53, 4 }
  0xc9   : > { %4362 = vmatmul.mubr.msk.bf16.vlgmr.msra.gmra.mrb[0].mxu0 %vm679_vm11, %v4046_v23  ;;  %v5252_v23 = vrot.slane %v2320_v56, 5 }
  0xca   : > { %4365 = vmatprep.mubr.msk.bf16.mxu0 %vm679_vm11, %v4047_v26 }
  0xcb   : > { %v2323_v18 = vor.u32 %v5252_v23, %v5250_v48 }
  0xd1   : > { %4366 = vmatmul.mubr.msk.bf16.gmra.mrb[4].mxu0 %vm679_vm11, %v4048_v6 }
 0x19c   : > { %v4363_v50 = vpop.f32.mrb[0].mxu0 }
 0x19d   : > { %v2049_v51 = vmul.f32 %v4363_v50, %v5235_v49  ;;  %v2001_v52 = vpop.f32.mrb[1].mxu0  ;;  %v2272_v50 = vld [vmem:[#allocation3 + $0x24] sm:$0x1] }
 0x19e   : > { %v2047_v58 = vmul.f32 %v5235_v49, %v2001_v52  ;;  %v4364_v62 = vpop.f32.mrb[2].mxu0 }
 0x19f   : > { %v2064_v25 = vadd.f32 %v5240_v24, %v2049_v51  ;;  %v2050_v57 = vmul.f32 %v4364_v62, %v5235_v49  ;;  %v2004_v3 = vpop.f32.mrb[3].mxu0 }
 0x1a0   : > { %v2062_v13 = vadd.f32 %v5240_v24, %v2047_v58  ;;  %v2048_v45 = vmul.f32 %v5235_v49, %v2004_v3 }
 0x1a1   : > { %v2072_v46 = vmax.f32 %v2064_v25, 0.0  ;;  %v2065_v26 = vadd.f32 %v5240_v24, %v2050_v57  ;;  %v2257_v25 = vld [vmem:[#allocation3 + $0x10] sm:$0xf]  ;;  %v2260_v57 = vld [vmem:[#allocation3 + $0x14] sm:$0x1] }
 0x1a2   : > { %v2070_v1 = vmax.f32 %v2062_v13, 0.0  ;;  %v2063_v33 = vadd.f32 %v5240_v24, %v2048_v45 }
 0x1a3   : > { %v4175_v63 = vpack.c.bf16 %v2072_v46, %v2072_v46  ;;  %v2073_v4 = vmax.f32 %v2065_v26, 0.0 }
 0x1a4   : > { %v4173_v6 = vpack.c.bf16 %v2070_v1, %v2070_v1  ;;  %v2071_v7 = vmax.f32 %v2063_v33, 0.0  ;;  %v4367_v17 = vpop.f32.mrb[4].mxu0 }
 0x1a5   : > { %v2186_v20 = vshrl.u32 %v4175_v63, 16  ;;  %v2189_v31 = vshll.u32 %v4175_v63, 16  ;;  %v4176_v8 = vpack.c.bf16 %v2073_v4, %v2073_v4  ;;  %v2053_v11 = vmul.f32 %v4367_v17, %v5235_v49  ;;  %v2017_v14 = vpop.f32.mrb[5].mxu0 }
 0x1a6   : > { %v2170_v2 = vshrl.u32 %v4173_v6, 16  ;;  %v2173_v22 = vshll.u32 %v4173_v6, 16  ;;  %v4174_v40 = vpack.c.bf16 %v2071_v7, %v2071_v7  ;;  %v2051_v44 = vmul.f32 %v5235_v49, %v2017_v14  ;;  %v4368_v28 = vpop.f32.mrb[6].mxu0 }
 0x1a7   : > { %v2188_v54 = vrot.slane %v2186_v20, 7  ;;  %v2194_v32 = vshrl.u32 %v4176_v8, 16  ;;  %v2197_v34 = vshll.u32 %v4176_v8, 16  ;;  %v2068_v35 = vadd.f32 %v5240_v24, %v2053_v11  ;;  %v2020_v36 = vpop.f32.mrb[7].mxu0  ;;  %v2287_v8 = vld [vmem:[#allocation3 + $0x38] sm:$0xf] }
 0x1a8   : > { %v2172_v38 = vrot.slane %v2170_v2, 7  ;;  %v2178_v16 = vshrl.u32 %v4174_v40, 16  ;;  %v2181_v41 = vshll.u32 %v4174_v40, 16  ;;  %v2066_v15 = vadd.f32 %v5240_v24, %v2051_v44 }
 0x1a9   : > { %v2191_v21 = vor.u32 %v2189_v31, %v2188_v54  ;;  %v2192_v10 = vrot.slane %v2188_v54, 4  ;;  %v2196_v61 = vrot.slane %v2194_v32, 7  ;;  %v2076_v59 = vmax.f32 %v2068_v35, 0.0  ;;  %v2278_v54 = vld [vmem:[#allocation3 + $0x2c] sm:$0x1] }
 0x1aa   : > { %v2175_v29 = vor.u32 %v2173_v22, %v2172_v38  ;;  %v2176_v9 = vrot.slane %v2172_v38, 4  ;;  %v2180_v53 = vrot.slane %v2178_v16, 7  ;;  %v2074_v56 = vmax.f32 %v2066_v15, 0.0  ;;  %v2290_v22 = vld [vmem:[#allocation3 + $0x3c] sm:$0x1] }
 0x1ab   : > { %v2264_v51 = vsel %vm5266_vm4, %v2191_v21, %v2263_v27  ;;  %v2267_v52 = vsel %vm5172_vm1, %v2192_v10, %v2266_v12  ;;  %v2199_v58 = vor.u32 %v2197_v34, %v2196_v61  ;;  %v2200_v62 = vrot.slane %v2196_v61, 4 }
 0x1ac   : > { %2265 = vst [vmem:[#allocation3 + $0x18] sm:$0xf] %v2264_v51  ;;  %2268 = vst [vmem:[#allocation3 + $0x1c] sm:$0x1] %v2267_v52  ;;  %v2252_v3 = vsel %vm5266_vm4, %v2175_v29, %v2251_v30  ;;  %v2255_v13 = vsel %vm5172_vm1, %v2176_v9, %v2254_v39  ;;  %v2183_v45 = vor.u32 %v2181_v41, %v2180_v53  ;;  %v2184_v46 = vrot.slane %v2180_v53, 4 }
 0x1ad   : > { %2253 = vst [vmem:[#allocation3 + $0x8] sm:$0xf] %v2252_v3  ;;  %2256 = vst [vmem:[#allocation3 + $0xc] sm:$0x1] %v2255_v13  ;;  %v2270_v26 = vsel %vm5266_vm4, %v2199_v58, %v2269_v42  ;;  %v2273_v1 = vsel %vm5172_vm1, %v2200_v62, %v2272_v50  ;;  %v4179_v33 = vpack.c.bf16 %v2076_v59, %v2076_v59  ;;  %v5294_v27 = vrot.slane %v2323_v18, 4 }
 0x1ae   : > { %v4177_v63 = vpack.c.bf16 %v2074_v56, %v2074_v56  ;;  %2271 = vst [vmem:[#allocation3 + $0x20] sm:$0xf] %v2270_v26  ;;  %2274 = vst [vmem:[#allocation3 + $0x24] sm:$0x1] %v2273_v1  ;;  %v2258_v4 = vsel %vm5266_vm4, %v2183_v45, %v2257_v25  ;;  %v2261_v6 = vsel %vm5172_vm1, %v2184_v46, %v2260_v57  ;;  %v5298_v12 = vrot.slane %v2326_v19, 5 }
 0x1af   : > { %v2054_v7 = vmul.f32 %v4368_v28, %v5235_v49  ;;  %v2052_v17 = vmul.f32 %v5235_v49, %v2020_v36  ;;  %2259 = vst [vmem:[#allocation3 + $0x10] sm:$0xf] %v2258_v4  ;;  %2262 = vst [vmem:[#allocation3 + $0x14] sm:$0x1] %v2261_v6  ;;  %v2218_v20 = vshrl.u32 %v4179_v33, 16  ;;  %v2221_v49 = vshll.u32 %v4179_v33, 16 }
 0x1b0   : > { %v2202_v31 = vshrl.u32 %v4177_v63, 16  ;;  %v2205_v44 = vshll.u32 %v4177_v63, 16  ;;  %v2275_v28 = vld [vmem:[#allocation3 + $0x28] sm:$0xf]  ;;  %v2329_v39 = vsel %vm4821_vm10, %v5294_v27, %v5298_v12  ;;  %v2293_v9 = vld [vmem:[#allocation3 + $0x40] sm:$0xf] }
 0x1b1   : > { %v2069_v11 = vadd.f32 %v5240_v24, %v2054_v7  ;;  %v2067_v14 = vadd.f32 %v5240_v24, %v2052_v17  ;;  %v2220_v2 = vrot.slane %v2218_v20, 7  ;;  %v2296_v50 = vld [vmem:[#allocation3 + $0x44] sm:$0x1]  ;;  %v2281_v56 = vld [vmem:[#allocation3 + $0x30] sm:$0xf] }
 0x1b2   : > { %v2204_v40 = vrot.slane %v2202_v31, 7  ;;  %v2284_v3 = vld [vmem:[#allocation3 + $0x34] sm:$0x1] }
 0x1b3   : > { %v2077_v30 = vmax.f32 %v2069_v11, 0.0  ;;  %v2075_v32 = vmax.f32 %v2067_v14, 0.0  ;;  %v2223_v34 = vor.u32 %v2221_v49, %v2220_v2  ;;  %v2224_v24 = vrot.slane %v2220_v2, 4  ;;  %v5300_v48 = vld [vmem:[#allocation3 + $0x18] sm:$0xf] }
 0x1b4   : > { %v2207_v35 = vor.u32 %v2205_v44, %v2204_v40  ;;  %v2208_v36 = vrot.slane %v2204_v40, 4  ;;  %v5302_v38 = vld [vmem:[#allocation3 + $0x8] sm:$0xf]  ;;  %v5304_v19 = vld [vmem:[#allocation3 + $0xc] sm:$0x1]  ;;  %v2359_v29 = vshrl.u32 %v5300_v48, 16 }
 0x1b5   : > { %v4180_v23 = vpack.c.bf16 %v2077_v30, %v2077_v30  ;;  %v4178_v18 = vpack.c.bf16 %v2075_v32, %v2075_v32  ;;  %v2288_v16 = vsel %vm5266_vm4, %v2223_v34, %v2287_v8  ;;  %v2291_v41 = vsel %vm5172_vm1, %v2224_v24, %v2290_v22  ;;  %v5328_v1 = vld [vmem:[#allocation3 + $0x1c] sm:$0x1]  ;;  %v5332_v20 = vld [vmem:[#allocation3 + $0x20] sm:$0xf] }
 0x1b6   : > { %v2276_v15 = vsel %vm5266_vm4, %v2207_v35, %v2275_v28  ;;  %v2279_v21 = vsel %vm5172_vm1, %v2208_v36, %v2278_v54  ;;  %2289 = vst [vmem:[#allocation3 + $0x38] sm:$0xf] %v2288_v16  ;;  %2292 = vst [vmem:[#allocation3 + $0x3c] sm:$0x1] %v2291_v41  ;;  %v5318_v59 = vld [vmem:[#allocation3 + $0x10] sm:$0xf] }
 0x1b7   : > { %2277 = vst [vmem:[#allocation3 + $0x28] sm:$0xf] %v2276_v15  ;;  %2280 = vst [vmem:[#allocation3 + $0x2c] sm:$0x1] %v2279_v21  ;;  %v2226_v10 = vshrl.u32 %v4180_v23, 16  ;;  %v2229_v61 = vshll.u32 %v4180_v23, 16 }
 0x1b8   : > { %v2210_v42 = vshrl.u32 %v4178_v18, 16  ;;  %v2213_v53 = vshll.u32 %v4178_v18, 16  ;;  %v2331_v51 = vshrl.u32 %v5302_v38, 16  ;;  %v2334_v52 = vshll.u32 %v5302_v38, 16  ;;  %v5324_v62 = vld [vmem:[#allocation3 + $0x14] sm:$0x1] }
 0x1b9   : > { %v2340_v58 = vshll.u32 %v5304_v19, 16  ;;  %v2228_v25 = vrot.slane %v2226_v10, 7  ;;  %v2345_v13 = vshrl.u32 %v5318_v59, 16  ;;  %v2348_v45 = vshll.u32 %v5318_v59, 16  ;;  %v5348_v23 = vld [vmem:[#allocation3 + $0x24] sm:$0x1] }
 0x1ba   : > { %v2212_v57 = vrot.slane %v2210_v42, 7  ;;  %v2333_v46 = vrot.slane %v2331_v51, 4  ;;  %v2336_v26 = vrot.slane %v2334_v52, 5  ;;  %v2354_v33 = vshll.u32 %v5324_v62, 16 }
 0x1bb   : > { %v2362_v63 = vshll.u32 %v5300_v48, 16  ;;  %v2231_v4 = vor.u32 %v2229_v61, %v2228_v25  ;;  %v2232_v6 = vrot.slane %v2228_v25, 4  ;;  %v2342_v8 = vrot.slane %v2340_v58, 5 }
 0x1bc   : > { %v2215_v7 = vor.u32 %v2213_v53, %v2212_v57  ;;  %v2216_v17 = vrot.slane %v2212_v57, 4  ;;  %v2337_v31 = vor.u32 %v2336_v26, %v2333_v46  ;;  %v2347_v11 = vrot.slane %v2345_v13, 4  ;;  %v2679_v26 = vld [vmem:[%s5659_s4 + $0x8] sm:$0xf] }
 0x1bd   : > { %v2350_v14 = vrot.slane %v2348_v45, 5  ;;  %v2294_v2 = vsel %vm5266_vm4, %v2231_v4, %v2293_v9  ;;  %v2297_v49 = vsel %vm5172_vm1, %v2232_v6, %v2296_v50  ;;  %v2361_v54 = vrot.slane %v2359_v29, 4  ;;  %v5351_v16 = vld [vmem:[#allocation3 + $0x38] sm:$0xf]  ;;  %v5368_v12 = vld [vmem:[#allocation3 + $0x3c] sm:$0x1] }
 0x1be   : > { %v2282_v22 = vsel %vm5266_vm4, %v2215_v7, %v2281_v56  ;;  %v2285_v40 = vsel %vm5172_vm1, %v2216_v17, %v2284_v3  ;;  %2295 = vst [vmem:[#allocation3 + $0x40] sm:$0xf] %v2294_v2  ;;  %2298 = vst [vmem:[#allocation3 + $0x44] sm:$0x1] %v2297_v49  ;;  %v2338_v44 = vrot.slane %v2337_v31, 4  ;;  %v2364_v30 = vrot.slane %v2362_v63, 5 }
 0x1bf   : > { %2283 = vst [vmem:[#allocation3 + $0x30] sm:$0xf] %v2282_v22  ;;  %2286 = vst [vmem:[#allocation3 + $0x34] sm:$0x1] %v2285_v40  ;;  %v2351_v28 = vor.u32 %v2350_v14, %v2347_v11  ;;  %v2356_v32 = vrot.slane %v2354_v33, 5  ;;  %v2368_v34 = vshll.u32 %v5328_v1, 16 }
 0x1c0   : > { %v5343_v24 = vld [vmem:[#allocation3 + $0x28] sm:$0xf]  ;;  %v2373_v37 = vshrl.u32 %v5332_v20, 16  ;;  %v2343_v0 = vsel %vm4821_vm10, %v2338_v44, %v2342_v8  ;;  %v2365_v36 = vor.u32 %v2364_v30, %v2361_v54  ;;  %v2376_v18 = vshll.u32 %v5332_v20, 16  ;;  %v5360_v42 = vld [vmem:[#allocation3 + $0x2c] sm:$0x1] }
 0x1c1   : > { %v2352_v35 = vrot.slane %v2351_v28, 4  ;;  %v4063_v41 = vcombine.low %v2329_v39, %v2343_v0  ;;  %v2370_v15 = vrot.slane %v2368_v34, 5  ;;  %v2387_v9 = vshrl.u32 %v5343_v24, 16 }
 0x1c2   : > { %v2375_v21 = vrot.slane %v2373_v37, 4  ;;  %v2366_v61 = vrot.slane %v2365_v36, 4  ;;  %v2378_v29 = vrot.slane %v2376_v18, 5  ;;  %v2556_v50 = vsel %vm2454_vm3, %v5226_v43, 0  ;;  %v2623_v18 = vld [vmem:[#allocation3] sm:$0xe] }
 0x1c3   : > { %v2357_v10 = vsel %vm4821_vm10, %v2352_v35, %v2356_v32  ;;  %4371 = vmatprep.mubr.msk.bf16.mxu1 %vm2441_vm5, %v4063_v41  ;;  %v2382_v53 = vshll.u32 %v5348_v23, 16  ;;  %v2390_v27 = vshll.u32 %v5343_v24, 16  ;;  %v2415_v39 = vshrl.u32 %v5351_v16, 16  ;;  %v2624_v41 = vld [vmem:[#allocation3 + $0x8] sm:$0xe] }
 0x1c4   : > { %v2371_v56 = vsel %vm4821_vm10, %v2366_v61, %v2370_v15  ;;  %v2379_v51 = vor.u32 %v2378_v29, %v2375_v21  ;;  %v2389_v52 = vrot.slane %v2387_v9, 4  ;;  %v2418_v58 = vshll.u32 %v5351_v16, 16  ;;  %v2788_v61 = vld [vmem:[%s5659_s4 + $0xc] sm:$0xf] }
 0x1c5   : > { %v4064_v25 = vcombine.low %v2357_v10, %v2371_v56  ;;  %v2392_v57 = vrot.slane %v2390_v27, 5  ;;  %v2396_v3 = vshll.u32 %v5360_v42, 16  ;;  %v2417_v4 = vrot.slane %v2415_v39, 4  ;;  %v2627_v39 = vld [vmem:[#allocation3 + $0x20] sm:$0xe] }
 0x1c6   : > { %v2305_v43 = vld [vmem:[#allocation3 + $0x30] sm:$0xf]  ;;  %v5375_v13 = vld [vmem:[#allocation3 + $0x34] sm:$0x1]  ;;  %v2380_v33 = vrot.slane %v2379_v51, 4  ;;  %v2420_v6 = vrot.slane %v2418_v58, 5  ;;  %v4071_v36 = vcombine.low %v5230_v47, %v5302_v38  ;;  %v4072_v15 = vcombine.low %v5318_v59, %v5300_v48 }
 0x1c7   : > { %v2401_v45 = vshrl.u32 %v2305_v43, 16  ;;  %v2404_v46 = vshll.u32 %v2305_v43, 16  ;;  %4372 = vmatmul.mubr.msk.bf16.vlgmr.msra.gmra.mrb[0].mxu1 %vm2441_vm5, %v4064_v25  ;;  %v2393_v63 = vor.u32 %v2392_v57, %v2389_v52  ;;  %v2410_v31 = vshll.u32 %v5375_v13, 16 }
 0x1c8   : > { %4380 = vmatpush3.bf16.msra.mxu1 %v2556_v50  ;;  %v2424_v8 = vshll.u32 %v5368_v12, 16  ;;  %v2384_v11 = vrot.slane %v2382_v53, 5  ;;  %v2398_v2 = vrot.slane %v2396_v3, 5  ;;  %v2421_v49 = vor.u32 %v2420_v6, %v2417_v4  ;;  %v2629_v3 = vld [vmem:[#allocation3 + $0x30] sm:$0xe] }
 0x1c9   : > { %v2403_v7 = vrot.slane %v2401_v45, 4  ;;  %v2406_v17 = vrot.slane %v2404_v46, 5  ;;  %v2394_v14 = vrot.slane %v2393_v63, 4  ;;  %4598 = vmatprep.subr.msk.bf16.mxu1 %vm2454_vm3, %v2679_v26  ;;  %v2412_v32 = vrot.slane %v2410_v31, 5  ;;  %v2630_v46 = vld [vmem:[#allocation3 + $0x38] sm:$0xe] }
 0x1ca   : > { %v2385_v40 = vsel %vm4821_vm10, %v2380_v33, %v2384_v11  ;;  %v2422_v28 = vrot.slane %v2421_v49, 4  ;;  %v2426_v34 = vrot.slane %v2424_v8, 5  ;;  %v2705_v21 = vsel %vm2454_vm3, %v2679_v26, 0  ;;  %v3025_v63 = vld [vmem:[%s5659_s4 + $0x10] sm:$0xf] }
 0x1cb   : > { %v2407_v22 = vor.u32 %v2406_v17, %v2403_v7  ;;  %v2399_v44 = vsel %vm4821_vm10, %v2394_v14, %v2398_v2  ;;  %v4073_v10 = vcombine.low %v5332_v20, %v5343_v24  ;;  %v2649_v47 = vrot.slane %v5256_v5, 5  ;;  %v2625_v20 = vld [vmem:[#allocation3 + $0x10] sm:$0xe]  ;;  %v2628_v24 = vld [vmem:[#allocation3 + $0x28] sm:$0xe] }
 0x1cc   : > { %v4065_v54 = vcombine.low %v2385_v40, %v2399_v44  ;;  %v2427_v0 = vsel %vm4821_vm10, %v2422_v28, %v2426_v34  ;;  %v2653_v38 = vrot.slane %v5304_v19, 5  ;;  %v4079_v29 = vrot.slane %v2623_v18, 9  ;;  %v2626_v19 = vld [vmem:[#allocation3 + $0x18] sm:$0xe]  ;;  %v2899_v7 = vld [vmem:[#allocation3 + $0x10] sm:$0xf] }
 0x1cd   : > { %v2408_v30 = vrot.slane %v2407_v22, 4  ;;  %v4080_v9 = vrot.slane %v2624_v41, 9  ;;  %v4074_v5 = vcombine.low %v2305_v43, %v5351_v16  ;;  %v2657_v50 = vrot.slane %v5324_v62, 5  ;;  %v2897_v31 = vld [vmem:[#allocation3 + $0x8] sm:$0xf] }
 0x1ce   : > { %4375 = vmatprep.mubr.msk.bf16.mxu1 %vm2441_vm5, %v4065_v54  ;;  %v2650_v48 = vsel %vm4947_vm14, %v4079_v29, %v2649_v47  ;;  %v4081_v27 = vrot.slane %v2625_v20, 9  ;;  %v4084_v56 = vrot.slane %v2628_v24, 9  ;;  %v2669_v51 = vrot.slane %v5360_v42, 5  ;;  %v4633_v22 = vld [vmem:[#allocation3 + $0x8] ss:$8 sps:$4 sm:$0xff]  }
 0x1cf   : > { %v2413_v37 = vsel %vm4821_vm10, %v2408_v30, %v2412_v32  ;;  %v2654_v59 = vsel %vm4947_vm14, %v4080_v9, %v2653_v38  ;;  %v2661_v52 = vrot.slane %v5328_v1, 5  ;;  %v4082_v58 = vrot.slane %v2626_v19, 9  ;;  %v2903_v44 = vld [vmem:[#allocation3 + $0x20] sm:$0xf]  ;;  %v2907_v28 = vld [vmem:[#allocation3 + $0x30] sm:$0xf] }
 0x1d0   : > { %v4066_v35 = vcombine.low %v2413_v37, %v2427_v0  ;;  %v4087_v53 = vcombine.low %v2650_v48, %v2654_v59  ;;  %v4083_v25 = vrot.slane %v2627_v39, 9  ;;  %v2665_v57 = vrot.slane %v5348_v23, 5  ;;  %v2901_v32 = vld [vmem:[#allocation3 + $0x18] sm:$0xf]  ;;  %v5444_v34 = vld [vmem:[#allocation3 + $0x14] sm:$0x1] }
 0x1d1   : > { %v2658_v16 = vsel %vm4947_vm14, %v4081_v27, %v2657_v50  ;;  %v2670_v62 = vsel %vm4947_vm14, %v4084_v56, %v2669_v51  ;;  %v2662_v43 = vsel %vm4947_vm14, %v4082_v58, %v2661_v52  ;;  %v2822_v42 = vsel %vm2454_vm3, %v2788_v61, 0  ;;  %v4634_v47 = vld [vmem:[#allocation3 + $0x18] ss:$8 sps:$4 sm:$0xff]   ;;  %v4635_v59 = vld [vmem:[#allocation3 + $0x28] ss:$8 sps:$4 sm:$0xff]  }
 0x1d2   : > { %4376 = vmatmul.mubr.msk.bf16.gmra.mrb[4].mxu1 %vm2441_vm5, %v4066_v35  ;;  %v4088_v45 = vcombine.low %v2658_v16, %v2662_v43  ;;  %v2666_v1 = vsel %vm4947_vm14, %v4083_v25, %v2665_v57  ;;  %v4085_v33 = vrot.slane %v2629_v3, 9  ;;  %v2673_v23 = vrot.slane %v5375_v13, 5  ;;  %v2905_v35 = vld [vmem:[#allocation3 + $0x28] sm:$0xf]  ;;  %v5453_v20 = vld [vmem:[%s5659_s4 + $0x14] sm:$0xf] }
 0x1d3   : > { %4381 = vmatprep.mubr.msk.bf16.mxu1 %vm2441_vm5, %v4071_v36  ;;  %v4089_v26 = vcombine.low %v2666_v1, %v2670_v62  ;;  %v4086_v4 = vrot.slane %v2630_v46, 9  ;;  %v2677_v6 = vrot.slane %v5368_v12, 5  ;;  %v2928_v13 = vshrl.u32 %v2899_v7, 16  ;;  %v2911_v39 = vld [vmem:[#allocation3 + $0x40] sm:$0xf] }
 0x1d4   : > { %v2674_v17 = vsel %vm4947_vm14, %v4085_v33, %v2673_v23  ;;  %v2931_v8 = vshll.u32 %v2899_v7, 16  ;;  %v2914_v2 = vshrl.u32 %v2897_v31, 16  ;;  %v2917_v49 = vshll.u32 %v2897_v31, 16  ;;  %v5458_v56 = vld [vmem:[#allocation3 + $0x24] sm:$0x1] }
 0x1d5   : > { %v2678_v11 = vsel %vm4947_vm14, %v4086_v4, %v2677_v6  ;;  %v2930_v40 = vrot.slane %v2928_v13, 4  ;;  %v2956_v37 = vshrl.u32 %v2903_v44, 16  ;;  %v2959_v0 = vshll.u32 %v2903_v44, 16  ;;  %v2909_v62 = vld [vmem:[#allocation3 + $0x38] sm:$0xf] }
 0x1d6   : > { %v4090_v14 = vcombine.low %v2674_v17, %v2678_v11  ;;  %v2933_v12 = vrot.slane %v2931_v8, 5  ;;  %v2916_v54 = vrot.slane %v2914_v2, 4  ;;  %v2919_v30 = vrot.slane %v2917_v49, 5  ;;  %v5462_v3 = vld [vmem:[#allocation3 + $0x1c] sm:$0x1] }
 0x1d7   : > { %v2984_v18 = vshrl.u32 %v2907_v28, 16  ;;  %v2987_v41 = vshll.u32 %v2907_v28, 16  ;;  %v2937_v29 = vshll.u32 %v5444_v34, 16  ;;  %v2970_v9 = vshrl.u32 %v2905_v35, 16  ;;  %v5469_v4 = vld [vmem:[#allocation3 + $0x2c] sm:$0x1] }
 0x1d8   : > { %v2934_v36 = vor.u32 %v2933_v12, %v2930_v40  ;;  %v2920_v38 = vor.u32 %v2919_v30, %v2916_v54  ;;  %v2973_v48 = vshll.u32 %v2905_v35, 16  ;;  %v2958_v24 = vrot.slane %v2956_v37, 4  ;;  %v4636_v17 = vld [vmem:[#allocation3 + $0x38] ss:$8 sps:$4 sm:$0xff]  }
 0x1d9   : > { %v2989_v27 = vrot.slane %v2987_v41, 5  ;;  %v2939_v25 = vrot.slane %v2937_v29, 5  ;;  %v2972_v57 = vrot.slane %v2970_v9, 4  ;;  %v3015_v1 = vshll.u32 %v2911_v39, 16  ;;  %v3127_v29 = vld [vmem:[#allocation3 + $0x10] sm:$0xe] }
 0x1da   : > { %4382 = vmatmul.mubr.msk.bf16.vlgmr.msra.gmra.mrb[0].mxu1 %vm2441_vm5, %v4072_v15  ;;  %v3051_v15 = vsel %vm2454_vm3, %v3025_v63, 0  ;;  %v2935_v50 = vrot.slane %v2934_v36, 4  ;;  %v2921_v58 = vrot.slane %v2920_v38, 4  ;;  %v2975_v16 = vrot.slane %v2973_v48, 5 }
 0x1db   : > { %4390 = vmatpush3.bf16.msra.mxu1 %v2705_v21  ;;  %4385 = vmatprep.mubr.msk.bf16.mxu1 %vm2441_vm5, %v4073_v10  ;;  %v5447_v21 = vld [vmem:[#allocation3 + $0xc] sm:$0x1]  ;;  %v2942_v10 = vshrl.u32 %v2901_v32, 16  ;;  %v2998_v6 = vshrl.u32 %v2909_v62, 16  ;;  %v3001_v7 = vshll.u32 %v2909_v62, 16  ;;  %v2951_v13 = vshll.u32 %v5462_v3, 16 }
 0x1dc   : > { %4599 = vmatprep.subr.msk.bf16.mxu1 %vm2454_vm3, %v2788_v61  ;;  %v2945_v61 = vshll.u32 %v2901_v32, 16  ;;  %v2923_v19 = vshll.u32 %v5447_v21, 16  ;;  %v2976_v8 = vor.u32 %v2975_v16, %v2972_v57  ;;  %v2979_v40 = vshll.u32 %v5469_v4, 16  ;;  %v3129_v62 = vld [vmem:[#allocation3 + $0x20] sm:$0xe] }
 0x1dd   : > { %v2944_v51 = vrot.slane %v2942_v10, 4  ;;  %v3000_v54 = vrot.slane %v2998_v6, 4  ;;  %v3003_v30 = vrot.slane %v3001_v7, 5  ;;  %v2953_v35 = vrot.slane %v2951_v13, 5  ;;  %v5484_v10 = vld [vmem:[#allocation3 + $0x3c] sm:$0x1] }
 0x1de   : > { %v2947_v52 = vrot.slane %v2945_v61, 5  ;;  %v2925_v46 = vrot.slane %v2923_v19, 5  ;;  %v2977_v32 = vrot.slane %v2976_v8, 4  ;;  %v2981_v41 = vrot.slane %v2979_v40, 5 }
 0x1df   : > { %v3208_v48 = vsel %vm2454_vm3, %v5453_v20, 0  ;;  %v3168_v13 = vrot.slane %v5469_v4, 5 }
 0x1e0   : > { %v2948_v23 = vor.u32 %v2947_v52, %v2944_v51  ;;  %v2926_v31 = vsel %vm4821_vm10, %v2921_v58, %v2925_v46  ;;  %v3152_v58 = vrot.slane %v5447_v21, 5  ;;  %v3128_v46 = vld [vmem:[#allocation3 + $0x18] sm:$0xe] }
 0x1e1   : > { %v4113_v7 = vrot.slane %v3128_v46, 9 }
 0x1e2   : > { %4386 = vmatmul.mubr.msk.bf16.gmra.mrb[4].mxu1 %vm2441_vm5, %v4074_v5  ;;  %v2961_v5 = vrot.slane %v2959_v0, 5  ;;  %v2949_v44 = vrot.slane %v2948_v23, 4  ;;  %v5478_v0 = vld [vmem:[#allocation3 + $0x44] sm:$0x1]  ;;  %v3130_v23 = vld [vmem:[#allocation3 + $0x28] sm:$0xe] }
 0x1e3   : > { %4391 = vmatprep.mubr.msk.bf16.mxu1 %vm2441_vm5, %v4087_v53  ;;  %v2986_v53 = vrot.slane %v2984_v18, 4  ;;  %v3021_v38 = vshll.u32 %v5478_v0, 16  ;;  %v3180_v4 = vrot.slane %v5478_v0, 5 }
 0x1e4   : > { %v2962_v43 = vor.u32 %v2961_v5, %v2958_v24  ;;  %v2954_v61 = vsel %vm4821_vm10, %v2949_v44, %v2953_v35  ;;  %v3007_v5 = vshll.u32 %v5484_v10, 16 }
 0x1e5   : > { %v2990_v33 = vor.u32 %v2989_v27, %v2986_v53  ;;  %v3292_v53 = vld [vmem:[%s5659_s4 + $0x18] sm:$0xf]  ;;  %v4112_v27 = vrot.slane %v3127_v29, 9  ;;  %v3023_v51 = vrot.slane %v3021_v38, 5  ;;  %v3409_v38 = vld [vmem:[#allocation3 + $0x30] sm:$0xf] }
 0x1e6   : > { %v2963_v2 = vrot.slane %v2962_v43, 4  ;;  %v3131_v43 = vld [vmem:[#allocation3 + $0x30] sm:$0xe] }
 0x1e7   : > { %v2991_v12 = vrot.slane %v2990_v33, 4  ;;  %v3164_v33 = vrot.slane %v5458_v56, 5 }
 0x1ea   : > { %4392 = vmatmul.mubr.msk.bf16.vlgmr.msra.gmra.mrb[0].mxu1 %vm2441_vm5, %v4088_v45  ;;  %v5464_v45 = vld [vmem:[#allocation3 + $0x34] sm:$0x1] }
 0x1eb   : > { %4400 = vmatpush3.bf16.msra.mxu1 %v2822_v42  ;;  %4395 = vmatprep.mubr.msk.bf16.mxu1 %vm2441_vm5, %v4089_v26  ;;  %v3012_v42 = vshrl.u32 %v2911_v39, 16  ;;  %v2940_v26 = vsel %vm4821_vm10, %v2935_v50, %v2939_v25  ;;  %v2993_v11 = vshll.u32 %v5464_v45, 16  ;;  %v3126_v50 = vld [vmem:[#allocation3 + $0x8] sm:$0xe]  ;;  %v3156_v39 = vrot.slane %v5444_v34, 5 }
 0x1ec   : > { %4600 = vmatprep.subr.msk.bf16.mxu1 %vm2454_vm3, %v3025_v63  ;;  %v2965_v63 = vshll.u32 %v5458_v56, 16  ;;  %v4111_v52 = vrot.slane %v3126_v50, 9  ;;  %v3009_v25 = vrot.slane %v3007_v5, 5  ;;  %v3172_v6 = vrot.slane %v5464_v45, 5 }
 0x1ed   : > { %v3014_v49 = vrot.slane %v3012_v42, 4  ;;  %v2995_v37 = vrot.slane %v2993_v11, 5  ;;  %v3157_v16 = vsel %vm4947_vm14, %v4112_v27, %v3156_v39  ;;  %v3133_v11 = vld [vmem:[#allocation3 + $0x40] sm:$0xe]  ;;  %v3326_v45 = vsel %vm2454_vm3, %v3292_v53, 0 }
 0x1ee   : > { %v2967_v28 = vrot.slane %v2965_v63, 5  ;;  %v4116_v63 = vrot.slane %v3131_v43, 9  ;;  %v4118_v40 = vrot.slane %v3133_v11, 9  ;;  %v3477_v27 = vshll.u32 %v3409_v38, 16  ;;  %v3415_v39 = vld [vmem:[#allocation3 + $0x48] sm:$0xf] }
 0x1ef   : > { %v4639_v43 = vld [vmem:[#allocation3 + $0x30] ss:$8 sps:$4 sm:$0xff]  }
 0x1f0   : > { %v2968_v36 = vsel %vm4821_vm10, %v2963_v2, %v2967_v28  ;;  %v3173_v56 = vsel %vm4947_vm14, %v4116_v63, %v3172_v6  ;;  %v3176_v28 = vrot.slane %v5484_v10, 5  ;;  %v3413_v63 = vld [vmem:[#allocation3 + $0x40] sm:$0xf] }
 0x1f1   : > { %v4104_v9 = vcombine.low %v2954_v61, %v2968_v36 }
 0x1f2   : > { %4396 = vmatmul.mubr.msk.bf16.gmra.mrb[4].mxu1 %vm2441_vm5, %v4090_v14  ;;  %v4103_v14 = vcombine.low %v2926_v31, %v2940_v26  ;;  %v4114_v26 = vrot.slane %v3129_v62, 9  ;;  %v4115_v31 = vrot.slane %v3130_v23, 9  ;;  %v3479_v23 = vrot.slane %v3477_v27, 5 }
 0x1f3   : > { %4401 = vmatprep.mubr.msk.bf16.mxu1 %vm2441_vm5, %v4633_v22  ;;  %v3017_v22 = vrot.slane %v3015_v1, 5  ;;  %v3153_v1 = vsel %vm4947_vm14, %v4111_v52, %v3152_v58 }
 0x1f4   : > { %v4119_v21 = vcombine.low %v3153_v1, %v3157_v16  ;;  %v3165_v8 = vsel %vm4947_vm14, %v4114_v26, %v3164_v33 }
 0x1f5   : > { %v3018_v18 = vor.u32 %v3017_v22, %v3014_v49  ;;  %v3169_v49 = vsel %vm4947_vm14, %v4115_v31, %v3168_v13  ;;  %v3519_v31 = vshll.u32 %v3415_v39, 16 }
 0x1f6   : > { %v4121_v22 = vcombine.low %v3169_v49, %v3173_v56  ;;  %v5555_v56 = vld [vmem:[#allocation3 + $0x2c] sm:$0x1]  ;;  %v5559_v49 = vld [vmem:[#allocation3 + $0x34] sm:$0x1] }
 0x1f7   : > { %v3019_v19 = vrot.slane %v3018_v18, 4  ;;  %v3672_v60 = vrot.slane %v5559_v49, 5 }
 0x1f9   : > { %v3024_v57 = vsel %vm4821_vm10, %v3019_v19, %v3023_v51  ;;  %v3411_v19 = vld [vmem:[#allocation3 + $0x38] sm:$0xf]  ;;  %v5542_v51 = vld [vmem:[#allocation3 + $0x1c] sm:$0x1] }
 0x1fa   : > { %4402 = vmatmul.mubr.msk.bf16.vlgmr.msra.gmra.mrb[0].mxu1 %vm2441_vm5, %v4634_v47  ;;  %v3004_v47 = vor.u32 %v3003_v30, %v3000_v54  ;;  %v3401_v54 = vld [vmem:[#allocation3 + $0x10] sm:$0xf]  ;;  %v3181_v30 = vsel %vm4947_vm14, %v4118_v40, %v3180_v4  ;;  %v3488_v62 = vshrl.u32 %v3411_v19, 16  ;;  %v3441_v26 = vshll.u32 %v5542_v51, 16 }
 0x1fb   : > { %4410 = vmatpush3.bf16.msra.mxu1 %v3051_v15  ;;  %4405 = vmatprep.mubr.msk.bf16.mxu1 %vm2441_vm5, %v4635_v59  ;;  %v2996_v15 = vsel %vm4821_vm10, %v2991_v12, %v2995_v37  ;;  %v2982_v59 = vsel %vm4821_vm10, %v2977_v32, %v2981_v41  ;;  %v3529_v12 = vld [vmem:[%s5659_s4 + $0x1c] sm:$0xf]  ;;  %v3403_v32 = vld [vmem:[#allocation3 + $0x18] sm:$0xf]  ;;  %v3418_v37 = vshrl.u32 %v3401_v54, 16  ;;  %v3421_v0 = vshll.u32 %v3401_v54, 16 }
 0x1fc   : > { %4601 = vmatprep.subr.msk.bf16.mxu1 %vm2454_vm3, %v5453_v20  ;;  %v4105_v24 = vcombine.low %v2982_v59, %v2996_v15  ;;  %v3005_v20 = vrot.slane %v3004_v47, 4  ;;  %v3432_v18 = vshrl.u32 %v3403_v32, 16  ;;  %v3435_v41 = vshll.u32 %v3403_v32, 16  ;;  %v4637_v15 = vld [vmem:[#allocation3 + $0x10] ss:$8 sps:$4 sm:$0xff]  }
 0x1fd   : > { %v3420_v61 = vrot.slane %v3418_v37, 4  ;;  %v3423_v10 = vrot.slane %v3421_v0, 5  ;;  %v3407_v47 = vld [vmem:[#allocation3 + $0x28] sm:$0xf]  ;;  %v5539_v59 = vld [vmem:[#allocation3 + $0x14] sm:$0x1] }
 0x1fe   : > { %v3010_v34 = vsel %vm4821_vm10, %v3005_v20, %v3009_v25  ;;  %v3434_v29 = vrot.slane %v3432_v18, 4  ;;  %v3463_v5 = vshll.u32 %v3407_v47, 16  ;;  %v3555_v20 = vsel %vm2454_vm3, %v3529_v12, 0  ;;  %v4638_v25 = vld [vmem:[#allocation3 + $0x20] ss:$8 sps:$4 sm:$0xff]  }
 0x1ff   : > { %v4106_v42 = vcombine.low %v3010_v34, %v3024_v57  ;;  %v3424_v50 = vor.u32 %v3423_v10, %v3420_v61  ;;  %v3427_v57 = vshll.u32 %v5539_v59, 16  ;;  %v3491_v34 = vshll.u32 %v3411_v19, 16  ;;  %v5564_v54 = vld [vmem:[#allocation3 + $0x3c] sm:$0x1]  ;;  %v4640_v37 = vld [vmem:[#allocation3 + $0x40] ss:$8 sps:$4 sm:$0xff]  }
 0x200   : > { %v3465_v46 = vrot.slane %v3463_v5, 5  ;;  %v3490_v11 = vrot.slane %v3488_v62, 4  ;;  %v3443_v4 = vrot.slane %v3441_v26, 5  ;;  %v3521_v32 = vrot.slane %v3519_v31, 5  ;;  %v5573_v5 = vld [vmem:[#allocation3 + $0x44] sm:$0x1] }
 0x201   : > { %v3429_v13 = vrot.slane %v3427_v57, 5  ;;  %v5575_v19 = vld [vmem:[#allocation3 + $0x4c] sm:$0x1]  ;;  %v3511_v57 = vshll.u32 %v5573_v5, 16 }
 0x202   : > { %4406 = vmatmul.mubr.msk.bf16.gmra.mrb[4].mxu1 %vm2441_vm5, %v4636_v17  ;;  %v3160_v17 = vrot.slane %v5462_v3, 5  ;;  %v3132_v3 = vld [vmem:[#allocation3 + $0x38] sm:$0xe] }
 0x203   : > { %4411 = vmatprep.mubr.msk.bf16.mxu1 %vm2441_vm5, %v4103_v14  ;;  %v4117_v44 = vrot.slane %v3132_v3, 9  ;;  %v3502_v3 = vshrl.u32 %v3413_v63, 16 }
 0x204   : > { %v3161_v14 = vsel %vm4947_vm14, %v4113_v7, %v3160_v17  ;;  %v3516_v17 = vshrl.u32 %v3415_v39, 16 }
 0x205   : > { %v4120_v2 = vcombine.low %v3161_v14, %v3165_v8  ;;  %v3177_v35 = vsel %vm4947_vm14, %v4117_v44, %v3176_v28  ;;  %v3493_v14 = vrot.slane %v3491_v34, 5  ;;  %v3469_v28 = vshll.u32 %v5555_v56, 16 }
 0x206   : > { %v4122_v36 = vcombine.low %v3177_v35, %v3181_v30  ;;  %v3518_v30 = vrot.slane %v3516_v17, 4  ;;  %v3504_v61 = vrot.slane %v3502_v3, 4 }
 0x207   : > { %v3494_v18 = vor.u32 %v3493_v14, %v3490_v11  ;;  %v3634_v11 = vld [vmem:[#allocation3 + $0x30] sm:$0xe] }
 0x20a   : > { %4412 = vmatmul.mubr.msk.bf16.vlgmr.msra.gmra.mrb[0].mxu1 %vm2441_vm5, %v4104_v9  ;;  %v3437_v9 = vrot.slane %v3435_v41, 5 }
 0x20b   : > { %4420 = vmatpush3.bf16.msra.mxu1 %v3208_v48  ;;  %4415 = vmatprep.mubr.msk.bf16.mxu1 %vm2441_vm5, %v4105_v24  ;;  %v3405_v48 = vld [vmem:[#allocation3 + $0x20] sm:$0xf]  ;;  %v3460_v24 = vshrl.u32 %v3407_v47, 16 }
 0x20c   : > { %4602 = vmatprep.subr.msk.bf16.mxu1 %vm2454_vm3, %v3292_v53  ;;  %v3474_v53 = vshrl.u32 %v3409_v38, 16  ;;  %v3446_v52 = vshrl.u32 %v3405_v48, 16  ;;  %v3449_v58 = vshll.u32 %v3405_v48, 16  ;;  %v3438_v16 = vor.u32 %v3437_v9, %v3434_v29 }
 0x20d   : > { %v3462_v1 = vrot.slane %v3460_v24, 4  ;;  %v3497_v38 = vshll.u32 %v5564_v54, 16  ;;  %v3471_v9 = vrot.slane %v3469_v28, 5  ;;  %v3495_v24 = vrot.slane %v3494_v18, 4 }
 0x20e   : > { %v3476_v33 = vrot.slane %v3474_v53, 4  ;;  %v3448_v6 = vrot.slane %v3446_v52, 4  ;;  %v3451_v7 = vrot.slane %v3449_v58, 5  ;;  %v3439_v8 = vrot.slane %v3438_v16, 4  ;;  %v3630_v16 = vld [vmem:[#allocation3 + $0x10] sm:$0xe] }
 0x20f   : > { %v3499_v58 = vrot.slane %v3497_v38, 5  ;;  %v4159_v38 = vld [vmem:[%s5660_s5] ss:$0 sm:$0xff] }
 0x210   : > { %v3452_v44 = vor.u32 %v3451_v7, %v3448_v6  ;;  %v3444_v0 = vsel %vm4821_vm10, %v3439_v8, %v3443_v4  ;;  %v3513_v6 = vrot.slane %v3511_v57, 5  ;;  %v3633_v8 = vld [vmem:[#allocation3 + $0x28] sm:$0xe]  ;;  %v4147_v4 = vrot.slane %v3634_v11, 9 }
 0x212   : > { %4416 = vmatmul.mubr.msk.bf16.gmra.mrb[4].mxu1 %vm2441_vm5, %v4106_v42  ;;  %v5548_v42 = vld [vmem:[%s5659_s4 + $0x20] sm:$0xf]  ;;  %v3453_v29 = vrot.slane %v3452_v44, 4 }
 0x213   : > { %4421 = vmatprep.mubr.msk.bf16.mxu1 %vm2441_vm5, %v4119_v21  ;;  %v3425_v21 = vrot.slane %v3424_v50, 4  ;;  %v3522_v50 = vor.u32 %v3521_v32, %v3518_v30  ;;  %v3712_v34 = vsel %vm2454_vm3, %v5548_v42, 0  ;;  %v3676_v30 = vrot.slane %v5564_v54, 5 }
 0x214   : > { %v3680_v54 = vrot.slane %v5573_v5, 5 }
 0x215   : > { %v3430_v40 = vsel %vm4821_vm10, %v3425_v21, %v3429_v13  ;;  %v3523_v21 = vrot.slane %v3522_v50, 4 }
 0x216   : > { %v4135_v41 = vcombine.low %v3430_v40, %v3444_v0  ;;  %v3635_v40 = vld [vmem:[#allocation3 + $0x38] sm:$0xe]  ;;  %v3636_v0 = vld [vmem:[#allocation3 + $0x40] sm:$0xe] }
 0x217   : > { %v4148_v28 = vrot.slane %v3635_v40, 9 }
 0x21a   : > { %4422 = vmatmul.mubr.msk.bf16.vlgmr.msra.gmra.mrb[0].mxu1 %vm2441_vm5, %v4120_v2  ;;  %v5557_v2 = vld [vmem:[#allocation3 + $0x24] sm:$0x1] }
 0x21b   : > { %4430 = vmatpush3.bf16.msra.mxu1 %v3326_v45  ;;  %4425 = vmatprep.mubr.msk.bf16.mxu1 %vm2441_vm5, %v4121_v22  ;;  %v3466_v45 = vor.u32 %v3465_v46, %v3462_v1  ;;  %v3505_v22 = vshll.u32 %v3413_v63, 16  ;;  %v3455_v35 = vshll.u32 %v5557_v2, 16  ;;  %v3656_v63 = vrot.slane %v5539_v59, 5 }
 0x21c   : > { %4603 = vmatprep.subr.msk.bf16.mxu1 %vm2454_vm3, %v3529_v12  ;;  %v3480_v12 = vor.u32 %v3479_v23, %v3476_v33  ;;  %v3631_v33 = vld [vmem:[#allocation3 + $0x18] sm:$0xe]  ;;  %v4143_v23 = vrot.slane %v3630_v16, 9  ;;  %v3664_v44 = vrot.slane %v5557_v2, 5 }
 0x21d   : > { %v3507_v10 = vrot.slane %v3505_v22, 5  ;;  %v3457_v53 = vrot.slane %v3455_v35, 5  ;;  %v4144_v7 = vrot.slane %v3631_v33, 9  ;;  %v4146_v22 = vrot.slane %v3633_v8, 9 }
 0x21e   : > { %v3481_v47 = vrot.slane %v3480_v12, 4  ;;  %v3657_v13 = vsel %vm4947_vm14, %v4143_v23, %v3656_v63 }
 0x21f   : > { %v3508_v39 = vor.u32 %v3507_v10, %v3504_v61 }
 0x221   : > { %v3509_v46 = vrot.slane %v3508_v39, 4 }
 0x222   : > { %4426 = vmatmul.mubr.msk.bf16.gmra.mrb[4].mxu1 %vm2441_vm5, %v4122_v36  ;;  %v3483_v36 = vshll.u32 %v5559_v49, 16 }
 0x223   : > { %4431 = vmatprep.mubr.msk.bf16.mxu1 %vm2441_vm5, %v4637_v15  ;;  %v3467_v15 = vrot.slane %v3466_v45, 4  ;;  %v3514_v17 = vsel %vm4821_vm10, %v3509_v46, %v3513_v6  ;;  %v3632_v45 = vld [vmem:[#allocation3 + $0x20] sm:$0xe] }
 0x224   : > { %v3485_v48 = vrot.slane %v3483_v36, 5  ;;  %v4145_v12 = vrot.slane %v3632_v45, 9  ;;  %v3677_v36 = vsel %vm4947_vm14, %v4148_v28, %v3676_v30 }
 0x225   : > { %v3472_v27 = vsel %vm4821_vm10, %v3467_v15, %v3471_v9  ;;  %v3684_v15 = vrot.slane %v5575_v19, 5  ;;  %v4160_v9 = vld [vmem:[%s5661_s6] ss:$0 sm:$0xff] }
 0x226   : > { %v3486_v52 = vsel %vm4821_vm10, %v3481_v47, %v3485_v48  ;;  %v3665_v35 = vsel %vm4947_vm14, %v4145_v12, %v3664_v44 }
 0x22a   : > { %4432 = vmatmul.mubr.msk.bf16.vlgmr.msra.gmra.mrb[0].mxu1 %vm2441_vm5, %v4638_v25  ;;  %v3458_v25 = vsel %vm4821_vm10, %v3453_v29, %v3457_v53 }
 0x22b   : > { %4440 = vmatpush3.bf16.msra.mxu1 %v3555_v20  ;;  %4435 = vmatprep.mubr.msk.bf16.mxu1 %vm2441_vm5, %v4639_v43  ;;  %v3525_v20 = vshll.u32 %v5575_v19, 16  ;;  %v4136_v62 = vcombine.low %v3458_v25, %v3472_v27  ;;  %v3500_v43 = vsel %vm4821_vm10, %v3495_v24, %v3499_v58 }
 0x22c   : > { %4604 = vmatprep.subr.msk.bf16.mxu1 %vm2454_vm3, %v5548_v42  ;;  %v4137_v1 = vcombine.low %v3486_v52, %v3500_v43  ;;  %v3660_v42 = vrot.slane %v5542_v51, 5  ;;  %v3668_v51 = vrot.slane %v5555_v56, 5  ;;  %v3673_v56 = vsel %vm4947_vm14, %v4147_v4, %v3672_v60 }
 0x22d   : > { %v3527_v26 = vrot.slane %v3525_v20, 5  ;;  %v4153_v2 = vcombine.low %v3673_v56, %v3677_v36 }
 0x22e   : > { %v3661_v59 = vsel %vm4947_vm14, %v4144_v7, %v3660_v42  ;;  %v3669_v32 = vsel %vm4947_vm14, %v4146_v22, %v3668_v51 }
 0x22f   : > { %v3528_v31 = vsel %vm4821_vm10, %v3523_v21, %v3527_v26  ;;  %v4151_v3 = vcombine.low %v3657_v13, %v3661_v59  ;;  %v4152_v49 = vcombine.low %v3665_v35, %v3669_v32 }
 0x230   : > { %v4138_v14 = vcombine.low %v3514_v17, %v3528_v31 }
 0x232   : > { %4436 = vmatmul.mubr.msk.bf16.gmra.mrb[4].mxu1 %vm2441_vm5, %v4640_v37  ;;  %v3637_v37 = vld [vmem:[#allocation3 + $0x48] sm:$0xe] }
 0x233   : > { %4441 = vmatprep.mubr.msk.bf16.mxu1 %vm2441_vm5, %v4135_v41  ;;  %v4150_v18 = vrot.slane %v3637_v37, 9  ;;  %v4149_v41 = vrot.slane %v3636_v0, 9 }
 0x235   : > { %v3681_v61 = vsel %vm4947_vm14, %v4149_v41, %v3680_v54  ;;  %v3685_v10 = vsel %vm4947_vm14, %v4150_v18, %v3684_v15 }
 0x236   : > { %v4154_v47 = vcombine.low %v3681_v61, %v3685_v10 }
 0x23a   : > { %4442 = vmatmul.mubr.msk.bf16.vlgmr.msra.gmra.mrb[0].mxu1 %vm2441_vm5, %v4136_v62 }
 0x23b   : > { %4450 = vmatpush3.bf16.msra.mxu1 %v3712_v34  ;;  %4445 = vmatprep.mubr.msk.bf16.mxu1 %vm2441_vm5, %v4137_v1 }
 0x242   : > { %4446 = vmatmul.mubr.msk.bf16.gmra.mrb[4].mxu1 %vm2441_vm5, %v4138_v14 }
 0x243   : > { %4451 = vmatprep.mubr.msk.bf16.mxu1 %vm2441_vm5, %v4151_v3 }
 0x24a   : > { %4452 = vmatmul.mubr.msk.bf16.vlgmr.msra.gmra.mrb[0].mxu1 %vm2441_vm5, %v4152_v49 }
 0x24b   : > { %4455 = vmatprep.mubr.msk.bf16.mxu1 %vm2441_vm5, %v4153_v2 }
 0x252   : > { %4456 = vmatmul.mubr.msk.bf16.gmra.mrb[4].mxu1 %vm2441_vm5, %v4154_v47 }
 0x31d   : > { %v4453_v29 = vpop.f32.mrb[0].mxu1 }
 0x31e   : > { %v3796_v48 = vmul.f32 %v4453_v29, %v4159_v38  ;;  %v3748_v24 = vpop.f32.mrb[1].mxu1 }
 0x31f   : > { %v3794_v5 = vmul.f32 %v4159_v38, %v3748_v24  ;;  %v4454_v19 = vpop.f32.mrb[2].mxu1 }
 0x320   : > { %v3811_v50 = vadd.f32 %v4160_v9, %v3796_v48  ;;  %v3797_v55 = vmul.f32 %v4454_v19, %v4159_v38  ;;  %v3751_v53 = vpop.f32.mrb[3].mxu1 }
 0x321   : > { %v3809_v27 = vadd.f32 %v4160_v9, %v3794_v5  ;;  %v3795_v39 = vmul.f32 %v4159_v38, %v3751_v53 }
 0x322   : > { %v3819_v20 = vmax.f32 %v3811_v50, 0.0  ;;  %v3812_v52 = vadd.f32 %v4160_v9, %v3797_v55 }
 0x323   : > { %v3817_v58 = vmax.f32 %v3809_v27, 0.0  ;;  %v3810_v25 = vadd.f32 %v4160_v9, %v3795_v39 }
 0x324   : > { %v4183_v57 = vpack.c.bf16 %v3819_v20, %v3819_v20  ;;  %v3820_v16 = vmax.f32 %v3812_v52, 0.0 }
 0x325   : > { %v4181_v62 = vpack.c.bf16 %v3817_v58, %v3817_v58  ;;  %v3818_v34 = vmax.f32 %v3810_v25, 0.0  ;;  %v4457_v43 = vpop.f32.mrb[4].mxu1 }
 0x326   : > { %3859 = vst.msk [vmem:[%s5634_s12 + $0x8] sm:$0xf] %vm2086_vm0, %v4183_v57  ;;  %v4184_v1 = vpack.c.bf16 %v3820_v16, %v3820_v16  ;;  %v3800_v46 = vmul.f32 %v4457_v43, %v4159_v38  ;;  %v3764_v21 = vpop.f32.mrb[5].mxu1 }
 0x327   : > { %3857 = vst.msk [vmem:[%s5634_s12] sm:$0xf] %vm2086_vm0, %v4181_v62  ;;  %v4182_v26 = vpack.c.bf16 %v3818_v34, %v3818_v34  ;;  %v3798_v33 = vmul.f32 %v4159_v38, %v3764_v21  ;;  %v4458_v23 = vpop.f32.mrb[6].mxu1 }
 0x328   : > { %3860 = vst.msk [vmem:[%s5634_s12 + $0xc] sm:$0xf] %vm2086_vm0, %v4184_v1  ;;  %v3815_v63 = vadd.f32 %v4160_v9, %v3800_v46  ;;  %v3801_v6 = vmul.f32 %v4458_v23, %v4159_v38  ;;  %v3767_v7 = vpop.f32.mrb[7].mxu1 }
 0x329   : > { %3858 = vst.msk [vmem:[%s5634_s12 + $0x4] sm:$0xf] %vm2086_vm0, %v4182_v26  ;;  %v3813_v42 = vadd.f32 %v4160_v9, %v3798_v33  ;;  %v3799_v17 = vmul.f32 %v4159_v38, %v3767_v7 }
 0x32a   : > { %v3823_v31 = vmax.f32 %v3815_v63, 0.0  ;;  %v3816_v13 = vadd.f32 %v4160_v9, %v3801_v6 }
 0x32b   : > { %v3821_v8 = vmax.f32 %v3813_v42, 0.0  ;;  %v3814_v11 = vadd.f32 %v4160_v9, %v3799_v17 }
 0x32c   : > { %v4187_v14 = vpack.c.bf16 %v3823_v31, %v3823_v31  ;;  %v3824_v59 = vmax.f32 %v3816_v13, 0.0 }
 0x32d   : > { %v4185_v45 = vpack.c.bf16 %v3821_v8, %v3821_v8  ;;  %v3822_v3 = vmax.f32 %v3814_v11, 0.0 }
 0x32e   : > { %3863 = vst.msk [vmem:[%s5634_s12 + $0x18] sm:$0xf] %vm2086_vm0, %v4187_v14  ;;  %v4188_v22 = vpack.c.bf16 %v3824_v59, %v3824_v59 }
 0x32f   : > { %3861 = vst.msk [vmem:[%s5634_s12 + $0x10] sm:$0xf] %vm2086_vm0, %v4185_v45  ;;  %v4186_v51 = vpack.c.bf16 %v3822_v3, %v3822_v3 }
 0x330   : > { %3864 = vst.msk [vmem:[%s5634_s12 + $0x1c] sm:$0xf] %vm2086_vm0, %v4188_v22 }
 0x331   : > { %3862 = vst.msk [vmem:[%s5634_s12 + $0x14] sm:$0xf] %vm2086_vm0, %v4186_v51 }
 0x332 PF: > { %s17_s24 = sadd.s32 1, %s4647_s24  }
 0x333   : > { %p14_p4 = scmp.ge.s32.totalorder %s17_s24, 4  }
 0x335   :  { %16 = sbr.rel (!%p14_p4) target bundleno = 1 (0x1), region = 87 }

</bundles_post_ra>
